<compile_context>
chip_gen: v7x
topology: tpu7x:2x2x1
jax: 0.10.0
libtpu: 0.0.40
codegen_flags: <defaults>
</compile_context>

<pallas_src>
import jax
import jax.numpy as jnp
from jax.experimental import pallas as pl
from jax.experimental.pallas import tpu as pltpu

N_TOWERS = 3
C_MID = 6                       # channels per tower
C_OUT = N_TOWERS * C_MID        # 18
C_OUT_PAD = 24                  # padded to a multiple of 8 sublanes
K_WIN = 5                       # unified (largest) conv window
PAD = K_WIN // 2                # 2


def _make_kernel(n_batch, c_in, w_pad, q_cols, k_pad):
    """Kernel closed over static geometry.

    x_ref : (N, C, XW)         zero-padded images, spatial dims flattened row-major,
                               lane axis zero-padded out to XW.
    wt_ref: (C_OUT_PAD, K_PAD) fused tower weights; column 25*C holds the bias.
    o_ref : (N, C_OUT_PAD, Q)  channels-first output, Q lane-dense (multiple of 128).
    """
    n_taps = K_WIN * K_WIN

    def kernel(x_ref, wt_ref, o_ref):
        x = x_ref[...]                                    # (N, C, XW) -- tiny
        n_q = n_batch * q_cols

        # In-VMEM im2col: patch-row block t is the flattened padded image shifted
        # left by s = kh*Wp + kw (static, unaligned lane slice; stays in-bounds).
        blocks = []
        for t in range(n_taps):                           # unrolled at trace time
            s = (t // K_WIN) * w_pad + (t % K_WIN)
            per_n = [x[n, :, s:s + q_cols] for n in range(n_batch)]   # (C, Q) each
            blocks.append(jnp.concatenate(per_n, axis=1))             # (C, N*Q)

        ones_row = jnp.ones((1, n_q), jnp.float32)        # folded-bias row
        zero_rows = jnp.zeros((k_pad - n_taps * c_in - 1, n_q), jnp.float32)
        p = jnp.concatenate(blocks + [ones_row, zero_rows], axis=0)   # (K_PAD, N*Q)

        # Single fused matmul for all three towers (+ bias), then ReLU (clamp min=0).
        h = jnp.dot(wt_ref[...], p, preferred_element_type=jnp.float32)
        h = jnp.maximum(h, 0.0)                           # (C_OUT_PAD, N*Q)

        for n in range(n_batch):                          # lane-dense (24, Q) stores
            o_ref[n] = h[:, n * q_cols:(n + 1) * q_cols]

    return kernel


def naive_inception_pallas(x, w1, b1, w3, b3, w5, b5):
    """x: (N, C_in, H, W) f32.  PyTorch OIHW weights:
       w1: (6, C_in, 1, 1), w3: (6, C_in, 3, 3), w5: (6, C_in, 5, 5); b*: (6,)."""
    N, C, H, W = x.shape
    Hp, Wp = H + 2 * PAD, W + 2 * PAD
    PQ = Hp * Wp                                   # flattened padded-image length (400)
    Q = pl.cdiv(PQ, 128) * 128                     # lane-dense per-batch width (512)
    s_max = (K_WIN - 1) * Wp + (K_WIN - 1)         # largest patch shift (84)
    XW = pl.cdiv(Q + s_max, 128) * 128             # input lane width; slices stay in-bounds
    n_taps_c = K_WIN * K_WIN * C                   # 25*C (=100)
    K_PAD = pl.cdiv(n_taps_c + 1, 128) * 128       # reduction dim padded to 128

    # ---- glue: pad spatially by 2, flatten row-major, zero-pad the lane axis ----
    xp = jnp.pad(x, ((0, 0), (0, 0), (PAD, PAD), (PAD, PAD)))       # (N, C, Hp, Wp)
    xflat = jnp.pad(xp.reshape(N, C, PQ), ((0, 0), (0, 0), (0, XW - PQ)))  # (N, C, XW)

    # ---- glue: embed 1x1/3x3 weights in the 5x5 footprint, fuse towers + bias ---
    w1_e = jnp.pad(jnp.transpose(w1, (0, 2, 3, 1)), ((0, 0), (2, 2), (2, 2), (0, 0)))
    w3_e = jnp.pad(jnp.transpose(w3, (0, 2, 3, 1)), ((0, 0), (1, 1), (1, 1), (0, 0)))
    w5_e = jnp.transpose(w5, (0, 2, 3, 1))
    w_rows = jnp.concatenate([w1_e, w3_e, w5_e], axis=0).reshape(C_OUT, n_taps_c)
    b_col = jnp.concatenate([b1, b3, b5]).reshape(C_OUT, 1)
    wt = jnp.concatenate(
        [w_rows, b_col, jnp.zeros((C_OUT, K_PAD - n_taps_c - 1), jnp.float32)], axis=1)
    wt = jnp.concatenate(
        [wt, jnp.zeros((C_OUT_PAD - C_OUT, K_PAD), jnp.float32)], axis=0)   # (24, 128)

    kernel = _make_kernel(N, C, Wp, Q, K_PAD)

    out = pl.pallas_call(
        kernel,
        out_shape=jax.ShapeDtypeStruct((N, C_OUT_PAD, Q), jnp.float32),
        grid=(1,),                                  # single step: batch folded in lanes
        in_specs=[
            pl.BlockSpec((N, C, XW), lambda i: (0, 0, 0)),
            pl.BlockSpec((C_OUT_PAD, K_PAD), lambda i: (0, 0)),
        ],
        out_specs=pl.BlockSpec((N, C_OUT_PAD, Q), lambda i: (0, 0, 0)),
        compiler_params=pltpu.CompilerParams(dimension_semantics=("arbitrary",)),
    )(xflat, wt)

    # Strip channel / lane padding, un-flatten, drop the conv halo. No transpose.
    return out[:, :C_OUT, :PQ].reshape(N, C_OUT, Hp, Wp)[:, :, :H, :W]


def naive_inception_ref(x, w1, b1, w3, b3, w5, b5):
    """Plain-JAX reference (lax.conv, NCHW/OIHW) mirroring the PyTorch forward."""
    def tower(w, b, pad):
        y = jax.lax.conv_general_dilated(
            x, w, (1, 1), ((pad, pad), (pad, pad)),
            dimension_numbers=("NCHW", "OIHW", "NCHW"),
            precision=jax.lax.Precision.HIGHEST)
        return jnp.maximum(y + b[None, :, None, None], 0.0)
    return jnp.concatenate(
        [tower(w1, b1, 0), tower(w3, b3, 1), tower(w5, b5, 2)], axis=1)


if __name__ == "__main__":
    key = jax.random.PRNGKey(0)
    N, C_in, H, W = 2, 4, 16, 16

    k_x, k1w, k1b, k3w, k3b, k5w, k5b = jax.random.split(key, 7)
    x = jax.random.normal(k_x, (N, C_in, H, W), dtype=jnp.float32)

    # PyTorch-style uniform init bounds (1/sqrt(fan_in)) per tower.
    bnd1 = 1.0 / (C_in * 1 * 1) ** 0.5
    bnd3 = 1.0 / (C_in * 3 * 3) ** 0.5
    bnd5 = 1.0 / (C_in * 5 * 5) ** 0.5
    w1 = jax.random.uniform(k1w, (C_MID, C_in, 1, 1), minval=-bnd1, maxval=bnd1, dtype=jnp.float32)
    b1 = jax.random.uniform(k1b, (C_MID,), minval=-bnd1, maxval=bnd1, dtype=jnp.float32)
    w3 = jax.random.uniform(k3w, (C_MID, C_in, 3, 3), minval=-bnd3, maxval=bnd3, dtype=jnp.float32)
    b3 = jax.random.uniform(k3b, (C_MID,), minval=-bnd3, maxval=bnd3, dtype=jnp.float32)
    w5 = jax.random.uniform(k5w, (C_MID, C_in, 5, 5), minval=-bnd5, maxval=bnd5, dtype=jnp.float32)
    b5 = jax.random.uniform(k5b, (C_MID,), minval=-bnd5, maxval=bnd5, dtype=jnp.float32)

    out = naive_inception_pallas(x, w1, b1, w3, b3, w5, b5)
    out = jax.block_until_ready(out)

    ref = naive_inception_ref(x, w1, b1, w3, b3, w5, b5)
    ref = jax.block_until_ready(ref)

    assert out.shape == (N, C_OUT, H, W), out.shape
    assert jnp.allclose(out, ref, rtol=1e-3, atol=1e-3), "mismatch vs. reference"

    print("KERNEL_OK")
</pallas_src>

<mosaic_0001>
module attributes {stable_mosaic.version = 11 : i64} {
  func.func @kernel(%arg0: i32, %arg1: memref<2x4x640xf32, #tpu.memory_space<vmem>>, %arg2: memref<24x128xf32, #tpu.memory_space<vmem>>, %arg3: memref<2x24x512xf32, #tpu.memory_space<vmem>>) attributes {dimension_semantics = [#tpu.dimension_semantics<arbitrary>], iteration_bounds = array<i64: 1>, scalar_prefetch = 0 : i64, scratch_operands = 0 : i64, tpu.core_type = #tpu.core_type<tc>, window_params = [{pipeline_mode = #tpu.pipeline_mode<synchronous>, transform_indices = @transform_0, window_bounds = array<i64: 2, 4, 640>}, {pipeline_mode = #tpu.pipeline_mode<synchronous>, transform_indices = @transform_1, window_bounds = array<i64: 24, 128>}, {pipeline_mode = #tpu.pipeline_mode<synchronous>, transform_indices = @transform_2, window_bounds = array<i64: 2, 24, 512>}]} {
    %c0 = arith.constant 0 : index
    %c0_0 = arith.constant 0 : index
    %c0_1 = arith.constant 0 : index
    %0 = vector.load %arg1[%c0, %c0_0, %c0_1] : memref<2x4x640xf32, #tpu.memory_space<vmem>>, vector<2x4x640xf32>
    %1 = vector.extract_strided_slice %0 {offsets = [0, 0, 0], sizes = [1, 4, 512], strides = [1, 1, 1]} : vector<2x4x640xf32> to vector<1x4x512xf32>
    %2 = vector.shape_cast %1 : vector<1x4x512xf32> to vector<4x512xf32>
    %3 = vector.extract_strided_slice %0 {offsets = [1, 0, 0], sizes = [1, 4, 512], strides = [1, 1, 1]} : vector<2x4x640xf32> to vector<1x4x512xf32>
    %4 = vector.shape_cast %3 : vector<1x4x512xf32> to vector<4x512xf32>
    %5 = tpu.concatenate %2, %4 in 1 : vector<4x512xf32>, vector<4x512xf32> -> vector<4x1024xf32>
    %6 = vector.extract_strided_slice %0 {offsets = [0, 0, 1], sizes = [1, 4, 512], strides = [1, 1, 1]} : vector<2x4x640xf32> to vector<1x4x512xf32>
    %7 = vector.shape_cast %6 : vector<1x4x512xf32> to vector<4x512xf32>
    %8 = vector.extract_strided_slice %0 {offsets = [1, 0, 1], sizes = [1, 4, 512], strides = [1, 1, 1]} : vector<2x4x640xf32> to vector<1x4x512xf32>
    %9 = vector.shape_cast %8 : vector<1x4x512xf32> to vector<4x512xf32>
    %10 = tpu.concatenate %7, %9 in 1 : vector<4x512xf32>, vector<4x512xf32> -> vector<4x1024xf32>
    %11 = vector.extract_strided_slice %0 {offsets = [0, 0, 2], sizes = [1, 4, 512], strides = [1, 1, 1]} : vector<2x4x640xf32> to vector<1x4x512xf32>
    %12 = vector.shape_cast %11 : vector<1x4x512xf32> to vector<4x512xf32>
    %13 = vector.extract_strided_slice %0 {offsets = [1, 0, 2], sizes = [1, 4, 512], strides = [1, 1, 1]} : vector<2x4x640xf32> to vector<1x4x512xf32>
    %14 = vector.shape_cast %13 : vector<1x4x512xf32> to vector<4x512xf32>
    %15 = tpu.concatenate %12, %14 in 1 : vector<4x512xf32>, vector<4x512xf32> -> vector<4x1024xf32>
    %16 = vector.extract_strided_slice %0 {offsets = [0, 0, 3], sizes = [1, 4, 512], strides = [1, 1, 1]} : vector<2x4x640xf32> to vector<1x4x512xf32>
    %17 = vector.shape_cast %16 : vector<1x4x512xf32> to vector<4x512xf32>
    %18 = vector.extract_strided_slice %0 {offsets = [1, 0, 3], sizes = [1, 4, 512], strides = [1, 1, 1]} : vector<2x4x640xf32> to vector<1x4x512xf32>
    %19 = vector.shape_cast %18 : vector<1x4x512xf32> to vector<4x512xf32>
    %20 = tpu.concatenate %17, %19 in 1 : vector<4x512xf32>, vector<4x512xf32> -> vector<4x1024xf32>
    %21 = vector.extract_strided_slice %0 {offsets = [0, 0, 4], sizes = [1, 4, 512], strides = [1, 1, 1]} : vector<2x4x640xf32> to vector<1x4x512xf32>
    %22 = vector.shape_cast %21 : vector<1x4x512xf32> to vector<4x512xf32>
    %23 = vector.extract_strided_slice %0 {offsets = [1, 0, 4], sizes = [1, 4, 512], strides = [1, 1, 1]} : vector<2x4x640xf32> to vector<1x4x512xf32>
    %24 = vector.shape_cast %23 : vector<1x4x512xf32> to vector<4x512xf32>
    %25 = tpu.concatenate %22, %24 in 1 : vector<4x512xf32>, vector<4x512xf32> -> vector<4x1024xf32>
    %26 = vector.extract_strided_slice %0 {offsets = [0, 0, 20], sizes = [1, 4, 512], strides = [1, 1, 1]} : vector<2x4x640xf32> to vector<1x4x512xf32>
    %27 = vector.shape_cast %26 : vector<1x4x512xf32> to vector<4x512xf32>
    %28 = vector.extract_strided_slice %0 {offsets = [1, 0, 20], sizes = [1, 4, 512], strides = [1, 1, 1]} : vector<2x4x640xf32> to vector<1x4x512xf32>
    %29 = vector.shape_cast %28 : vector<1x4x512xf32> to vector<4x512xf32>
    %30 = tpu.concatenate %27, %29 in 1 : vector<4x512xf32>, vector<4x512xf32> -> vector<4x1024xf32>
    %31 = vector.extract_strided_slice %0 {offsets = [0, 0, 21], sizes = [1, 4, 512], strides = [1, 1, 1]} : vector<2x4x640xf32> to vector<1x4x512xf32>
    %32 = vector.shape_cast %31 : vector<1x4x512xf32> to vector<4x512xf32>
    %33 = vector.extract_strided_slice %0 {offsets = [1, 0, 21], sizes = [1, 4, 512], strides = [1, 1, 1]} : vector<2x4x640xf32> to vector<1x4x512xf32>
    %34 = vector.shape_cast %33 : vector<1x4x512xf32> to vector<4x512xf32>
    %35 = tpu.concatenate %32, %34 in 1 : vector<4x512xf32>, vector<4x512xf32> -> vector<4x1024xf32>
    %36 = vector.extract_strided_slice %0 {offsets = [0, 0, 22], sizes = [1, 4, 512], strides = [1, 1, 1]} : vector<2x4x640xf32> to vector<1x4x512xf32>
    %37 = vector.shape_cast %36 : vector<1x4x512xf32> to vector<4x512xf32>
    %38 = vector.extract_strided_slice %0 {offsets = [1, 0, 22], sizes = [1, 4, 512], strides = [1, 1, 1]} : vector<2x4x640xf32> to vector<1x4x512xf32>
    %39 = vector.shape_cast %38 : vector<1x4x512xf32> to vector<4x512xf32>
    %40 = tpu.concatenate %37, %39 in 1 : vector<4x512xf32>, vector<4x512xf32> -> vector<4x1024xf32>
    %41 = vector.extract_strided_slice %0 {offsets = [0, 0, 23], sizes = [1, 4, 512], strides = [1, 1, 1]} : vector<2x4x640xf32> to vector<1x4x512xf32>
    %42 = vector.shape_cast %41 : vector<1x4x512xf32> to vector<4x512xf32>
    %43 = vector.extract_strided_slice %0 {offsets = [1, 0, 23], sizes = [1, 4, 512], strides = [1, 1, 1]} : vector<2x4x640xf32> to vector<1x4x512xf32>
    %44 = vector.shape_cast %43 : vector<1x4x512xf32> to vector<4x512xf32>
    %45 = tpu.concatenate %42, %44 in 1 : vector<4x512xf32>, vector<4x512xf32> -> vector<4x1024xf32>
    %46 = vector.extract_strided_slice %0 {offsets = [0, 0, 24], sizes = [1, 4, 512], strides = [1, 1, 1]} : vector<2x4x640xf32> to vector<1x4x512xf32>
    %47 = vector.shape_cast %46 : vector<1x4x512xf32> to vector<4x512xf32>
    %48 = vector.extract_strided_slice %0 {offsets = [1, 0, 24], sizes = [1, 4, 512], strides = [1, 1, 1]} : vector<2x4x640xf32> to vector<1x4x512xf32>
    %49 = vector.shape_cast %48 : vector<1x4x512xf32> to vector<4x512xf32>
    %50 = tpu.concatenate %47, %49 in 1 : vector<4x512xf32>, vector<4x512xf32> -> vector<4x1024xf32>
    %51 = vector.extract_strided_slice %0 {offsets = [0, 0, 40], sizes = [1, 4, 512], strides = [1, 1, 1]} : vector<2x4x640xf32> to vector<1x4x512xf32>
    %52 = vector.shape_cast %51 : vector<1x4x512xf32> to vector<4x512xf32>
    %53 = vector.extract_strided_slice %0 {offsets = [1, 0, 40], sizes = [1, 4, 512], strides = [1, 1, 1]} : vector<2x4x640xf32> to vector<1x4x512xf32>
    %54 = vector.shape_cast %53 : vector<1x4x512xf32> to vector<4x512xf32>
    %55 = tpu.concatenate %52, %54 in 1 : vector<4x512xf32>, vector<4x512xf32> -> vector<4x1024xf32>
    %56 = vector.extract_strided_slice %0 {offsets = [0, 0, 41], sizes = [1, 4, 512], strides = [1, 1, 1]} : vector<2x4x640xf32> to vector<1x4x512xf32>
    %57 = vector.shape_cast %56 : vector<1x4x512xf32> to vector<4x512xf32>
    %58 = vector.extract_strided_slice %0 {offsets = [1, 0, 41], sizes = [1, 4, 512], strides = [1, 1, 1]} : vector<2x4x640xf32> to vector<1x4x512xf32>
    %59 = vector.shape_cast %58 : vector<1x4x512xf32> to vector<4x512xf32>
    %60 = tpu.concatenate %57, %59 in 1 : vector<4x512xf32>, vector<4x512xf32> -> vector<4x1024xf32>
    %61 = vector.extract_strided_slice %0 {offsets = [0, 0, 42], sizes = [1, 4, 512], strides = [1, 1, 1]} : vector<2x4x640xf32> to vector<1x4x512xf32>
    %62 = vector.shape_cast %61 : vector<1x4x512xf32> to vector<4x512xf32>
    %63 = vector.extract_strided_slice %0 {offsets = [1, 0, 42], sizes = [1, 4, 512], strides = [1, 1, 1]} : vector<2x4x640xf32> to vector<1x4x512xf32>
    %64 = vector.shape_cast %63 : vector<1x4x512xf32> to vector<4x512xf32>
    %65 = tpu.concatenate %62, %64 in 1 : vector<4x512xf32>, vector<4x512xf32> -> vector<4x1024xf32>
    %66 = vector.extract_strided_slice %0 {offsets = [0, 0, 43], sizes = [1, 4, 512], strides = [1, 1, 1]} : vector<2x4x640xf32> to vector<1x4x512xf32>
    %67 = vector.shape_cast %66 : vector<1x4x512xf32> to vector<4x512xf32>
    %68 = vector.extract_strided_slice %0 {offsets = [1, 0, 43], sizes = [1, 4, 512], strides = [1, 1, 1]} : vector<2x4x640xf32> to vector<1x4x512xf32>
    %69 = vector.shape_cast %68 : vector<1x4x512xf32> to vector<4x512xf32>
    %70 = tpu.concatenate %67, %69 in 1 : vector<4x512xf32>, vector<4x512xf32> -> vector<4x1024xf32>
    %71 = vector.extract_strided_slice %0 {offsets = [0, 0, 44], sizes = [1, 4, 512], strides = [1, 1, 1]} : vector<2x4x640xf32> to vector<1x4x512xf32>
    %72 = vector.shape_cast %71 : vector<1x4x512xf32> to vector<4x512xf32>
    %73 = vector.extract_strided_slice %0 {offsets = [1, 0, 44], sizes = [1, 4, 512], strides = [1, 1, 1]} : vector<2x4x640xf32> to vector<1x4x512xf32>
    %74 = vector.shape_cast %73 : vector<1x4x512xf32> to vector<4x512xf32>
    %75 = tpu.concatenate %72, %74 in 1 : vector<4x512xf32>, vector<4x512xf32> -> vector<4x1024xf32>
    %76 = vector.extract_strided_slice %0 {offsets = [0, 0, 60], sizes = [1, 4, 512], strides = [1, 1, 1]} : vector<2x4x640xf32> to vector<1x4x512xf32>
    %77 = vector.shape_cast %76 : vector<1x4x512xf32> to vector<4x512xf32>
    %78 = vector.extract_strided_slice %0 {offsets = [1, 0, 60], sizes = [1, 4, 512], strides = [1, 1, 1]} : vector<2x4x640xf32> to vector<1x4x512xf32>
    %79 = vector.shape_cast %78 : vector<1x4x512xf32> to vector<4x512xf32>
    %80 = tpu.concatenate %77, %79 in 1 : vector<4x512xf32>, vector<4x512xf32> -> vector<4x1024xf32>
    %81 = vector.extract_strided_slice %0 {offsets = [0, 0, 61], sizes = [1, 4, 512], strides = [1, 1, 1]} : vector<2x4x640xf32> to vector<1x4x512xf32>
    %82 = vector.shape_cast %81 : vector<1x4x512xf32> to vector<4x512xf32>
    %83 = vector.extract_strided_slice %0 {offsets = [1, 0, 61], sizes = [1, 4, 512], strides = [1, 1, 1]} : vector<2x4x640xf32> to vector<1x4x512xf32>
    %84 = vector.shape_cast %83 : vector<1x4x512xf32> to vector<4x512xf32>
    %85 = tpu.concatenate %82, %84 in 1 : vector<4x512xf32>, vector<4x512xf32> -> vector<4x1024xf32>
    %86 = vector.extract_strided_slice %0 {offsets = [0, 0, 62], sizes = [1, 4, 512], strides = [1, 1, 1]} : vector<2x4x640xf32> to vector<1x4x512xf32>
    %87 = vector.shape_cast %86 : vector<1x4x512xf32> to vector<4x512xf32>
    %88 = vector.extract_strided_slice %0 {offsets = [1, 0, 62], sizes = [1, 4, 512], strides = [1, 1, 1]} : vector<2x4x640xf32> to vector<1x4x512xf32>
    %89 = vector.shape_cast %88 : vector<1x4x512xf32> to vector<4x512xf32>
    %90 = tpu.concatenate %87, %89 in 1 : vector<4x512xf32>, vector<4x512xf32> -> vector<4x1024xf32>
    %91 = vector.extract_strided_slice %0 {offsets = [0, 0, 63], sizes = [1, 4, 512], strides = [1, 1, 1]} : vector<2x4x640xf32> to vector<1x4x512xf32>
    %92 = vector.shape_cast %91 : vector<1x4x512xf32> to vector<4x512xf32>
    %93 = vector.extract_strided_slice %0 {offsets = [1, 0, 63], sizes = [1, 4, 512], strides = [1, 1, 1]} : vector<2x4x640xf32> to vector<1x4x512xf32>
    %94 = vector.shape_cast %93 : vector<1x4x512xf32> to vector<4x512xf32>
    %95 = tpu.concatenate %92, %94 in 1 : vector<4x512xf32>, vector<4x512xf32> -> vector<4x1024xf32>
    %96 = vector.extract_strided_slice %0 {offsets = [0, 0, 64], sizes = [1, 4, 512], strides = [1, 1, 1]} : vector<2x4x640xf32> to vector<1x4x512xf32>
    %97 = vector.shape_cast %96 : vector<1x4x512xf32> to vector<4x512xf32>
    %98 = vector.extract_strided_slice %0 {offsets = [1, 0, 64], sizes = [1, 4, 512], strides = [1, 1, 1]} : vector<2x4x640xf32> to vector<1x4x512xf32>
    %99 = vector.shape_cast %98 : vector<1x4x512xf32> to vector<4x512xf32>
    %100 = tpu.concatenate %97, %99 in 1 : vector<4x512xf32>, vector<4x512xf32> -> vector<4x1024xf32>
    %101 = vector.extract_strided_slice %0 {offsets = [0, 0, 80], sizes = [1, 4, 512], strides = [1, 1, 1]} : vector<2x4x640xf32> to vector<1x4x512xf32>
    %102 = vector.shape_cast %101 : vector<1x4x512xf32> to vector<4x512xf32>
    %103 = vector.extract_strided_slice %0 {offsets = [1, 0, 80], sizes = [1, 4, 512], strides = [1, 1, 1]} : vector<2x4x640xf32> to vector<1x4x512xf32>
    %104 = vector.shape_cast %103 : vector<1x4x512xf32> to vector<4x512xf32>
    %105 = tpu.concatenate %102, %104 in 1 : vector<4x512xf32>, vector<4x512xf32> -> vector<4x1024xf32>
    %106 = vector.extract_strided_slice %0 {offsets = [0, 0, 81], sizes = [1, 4, 512], strides = [1, 1, 1]} : vector<2x4x640xf32> to vector<1x4x512xf32>
    %107 = vector.shape_cast %106 : vector<1x4x512xf32> to vector<4x512xf32>
    %108 = vector.extract_strided_slice %0 {offsets = [1, 0, 81], sizes = [1, 4, 512], strides = [1, 1, 1]} : vector<2x4x640xf32> to vector<1x4x512xf32>
    %109 = vector.shape_cast %108 : vector<1x4x512xf32> to vector<4x512xf32>
    %110 = tpu.concatenate %107, %109 in 1 : vector<4x512xf32>, vector<4x512xf32> -> vector<4x1024xf32>
    %111 = vector.extract_strided_slice %0 {offsets = [0, 0, 82], sizes = [1, 4, 512], strides = [1, 1, 1]} : vector<2x4x640xf32> to vector<1x4x512xf32>
    %112 = vector.shape_cast %111 : vector<1x4x512xf32> to vector<4x512xf32>
    %113 = vector.extract_strided_slice %0 {offsets = [1, 0, 82], sizes = [1, 4, 512], strides = [1, 1, 1]} : vector<2x4x640xf32> to vector<1x4x512xf32>
    %114 = vector.shape_cast %113 : vector<1x4x512xf32> to vector<4x512xf32>
    %115 = tpu.concatenate %112, %114 in 1 : vector<4x512xf32>, vector<4x512xf32> -> vector<4x1024xf32>
    %116 = vector.extract_strided_slice %0 {offsets = [0, 0, 83], sizes = [1, 4, 512], strides = [1, 1, 1]} : vector<2x4x640xf32> to vector<1x4x512xf32>
    %117 = vector.shape_cast %116 : vector<1x4x512xf32> to vector<4x512xf32>
    %118 = vector.extract_strided_slice %0 {offsets = [1, 0, 83], sizes = [1, 4, 512], strides = [1, 1, 1]} : vector<2x4x640xf32> to vector<1x4x512xf32>
    %119 = vector.shape_cast %118 : vector<1x4x512xf32> to vector<4x512xf32>
    %120 = tpu.concatenate %117, %119 in 1 : vector<4x512xf32>, vector<4x512xf32> -> vector<4x1024xf32>
    %121 = vector.extract_strided_slice %0 {offsets = [0, 0, 84], sizes = [1, 4, 512], strides = [1, 1, 1]} : vector<2x4x640xf32> to vector<1x4x512xf32>
    %122 = vector.shape_cast %121 : vector<1x4x512xf32> to vector<4x512xf32>
    %123 = vector.extract_strided_slice %0 {offsets = [1, 0, 84], sizes = [1, 4, 512], strides = [1, 1, 1]} : vector<2x4x640xf32> to vector<1x4x512xf32>
    %124 = vector.shape_cast %123 : vector<1x4x512xf32> to vector<4x512xf32>
    %125 = tpu.concatenate %122, %124 in 1 : vector<4x512xf32>, vector<4x512xf32> -> vector<4x1024xf32>
    %cst = arith.constant 1.000000e+00 : f32
    %126 = vector.broadcast %cst : f32 to vector<1x1024xf32>
    %cst_2 = arith.constant 0.000000e+00 : f32
    %127 = vector.broadcast %cst_2 : f32 to vector<27x1024xf32>
    %128 = tpu.concatenate %5, %10, %15, %20, %25, %30, %35, %40, %45, %50, %55, %60, %65, %70, %75, %80 in 0 : vector<4x1024xf32>, vector<4x1024xf32>, vector<4x1024xf32>, vector<4x1024xf32>, vector<4x1024xf32>, vector<4x1024xf32>, vector<4x1024xf32>, vector<4x1024xf32>, vector<4x1024xf32>, vector<4x1024xf32>, vector<4x1024xf32>, vector<4x1024xf32>, vector<4x1024xf32>, vector<4x1024xf32>, vector<4x1024xf32>, vector<4x1024xf32> -> vector<64x1024xf32>
    %129 = tpu.concatenate %85, %90, %95, %100, %105, %110, %115, %120, %125, %126, %127 in 0 : vector<4x1024xf32>, vector<4x1024xf32>, vector<4x1024xf32>, vector<4x1024xf32>, vector<4x1024xf32>, vector<4x1024xf32>, vector<4x1024xf32>, vector<4x1024xf32>, vector<4x1024xf32>, vector<1x1024xf32>, vector<27x1024xf32> -> vector<64x1024xf32>
    %130 = tpu.concatenate %128, %129 in 0 : vector<64x1024xf32>, vector<64x1024xf32> -> vector<128x1024xf32>
    %c0_3 = arith.constant 0 : index
    %c0_4 = arith.constant 0 : index
    %131 = vector.load %arg2[%c0_3, %c0_4] : memref<24x128xf32, #tpu.memory_space<vmem>>, vector<24x128xf32>
    %cst_5 = arith.constant dense<0.000000e+00> : vector<24x1024xf32>
    %132 = tpu.matmul %131, %130, %cst_5 {dimension_numbers = #tpu.dot_dimension_numbers<[1], [0], [0], [1], [0, 0, 1, 1], [], []>} : vector<24x128xf32>, vector<128x1024xf32>, vector<24x1024xf32> -> vector<24x1024xf32>
    %cst_6 = arith.constant 0.000000e+00 : f32
    %133 = vector.broadcast %cst_6 : f32 to vector<24x1024xf32>
    %134 = arith.maximumf %132, %133 : vector<24x1024xf32>
    %135 = vector.extract_strided_slice %134 {offsets = [0, 0], sizes = [24, 512], strides = [1, 1]} : vector<24x1024xf32> to vector<24x512xf32>
    %c0_7 = arith.constant 0 : index
    %c0_8 = arith.constant 0 : index
    %c0_9 = arith.constant 0 : index
    %136 = vector.load %arg3[%c0_7, %c0_8, %c0_9] : memref<2x24x512xf32, #tpu.memory_space<vmem>>, vector<1x24x512xf32>
    %137 = vector.shape_cast %136 : vector<1x24x512xf32> to vector<24x512xf32>
    %138 = vector.shape_cast %135 : vector<24x512xf32> to vector<1x24x512xf32>
    tpu.vector_store %arg3[%c0_7, %c0_8, %c0_9], %138 {strides = array<i32>} : memref<2x24x512xf32, #tpu.memory_space<vmem>>, vector<1x24x512xf32>,
    %139 = vector.extract_strided_slice %134 {offsets = [0, 512], sizes = [24, 512], strides = [1, 1]} : vector<24x1024xf32> to vector<24x512xf32>
    %c1 = arith.constant 1 : index
    %c0_10 = arith.constant 0 : index
    %c0_11 = arith.constant 0 : index
    %140 = vector.load %arg3[%c1, %c0_10, %c0_11] : memref<2x24x512xf32, #tpu.memory_space<vmem>>, vector<1x24x512xf32>
    %141 = vector.shape_cast %140 : vector<1x24x512xf32> to vector<24x512xf32>
    %142 = vector.shape_cast %139 : vector<24x512xf32> to vector<1x24x512xf32>
    tpu.vector_store %arg3[%c1, %c0_10, %c0_11], %142 {strides = array<i32>} : memref<2x24x512xf32, #tpu.memory_space<vmem>>, vector<1x24x512xf32>,
    return
  }
  func.func @transform_0(%arg0: i32) -> (i32, i32, i32) {
    %c0_i32 = arith.constant 0 : i32
    %c0_i32_0 = arith.constant 0 : i32
    %c0_i32_1 = arith.constant 0 : i32
    %c0_i32_2 = arith.constant 0 : i32
    return %c0_i32, %c0_i32_0, %c0_i32_1 : i32, i32, i32
  }
  func.func @transform_1(%arg0: i32) -> (i32, i32) {
    %c0_i32 = arith.constant 0 : i32
    %c0_i32_0 = arith.constant 0 : i32
    %c0_i32_1 = arith.constant 0 : i32
    return %c0_i32, %c0_i32_0 : i32, i32
  }
  func.func @transform_2(%arg0: i32) -> (i32, i32, i32) {
    %c0_i32 = arith.constant 0 : i32
    %c0_i32_0 = arith.constant 0 : i32
    %c0_i32_1 = arith.constant 0 : i32
    %c0_i32_2 = arith.constant 0 : i32
    return %c0_i32, %c0_i32_0, %c0_i32_1 : i32, i32, i32
  }
}

</mosaic_0001>

<bundles_post_ra>
// kernel: tpu_custom_call.1
= control target key start
LH: loop header
LB: loop body
LE: loop exit
PB: predicated region body
PF: predicated region fallthrough
CT: control target
= control target key end

     0   :  { %7 = vsyncpa [#allocation3], 0  ;;  %s3290_s0 = inlined_call_operand.hbm [shape: f32[2,4,640], index: 0, kind: input, shape index: {}]   ;;  %s3291_s1 = inlined_call_operand.hbm [shape: f32[24,128], index: 1, kind: input, shape index: {}]   ;;  %s3292_s2 = inlined_call_operand.hbm [shape: f32[2,24,512], index: 2, kind: output, shape index: {}]  }
   0x1   :  { %8 = vsyncpa [#allocation6], 0 }
   0x2   :  { %9 = vsyncpa [#allocation4], 0  ;;  %s2342_s9 = smov [#allocation2]   ;;  %s2270_s13 = scalar_lea.hbm %s3290_s0, 640 }
   0x3   :  { %s15_s10 = sshll.u32 %s2342_s9, 4  ;;  %p2271_p0 = scmp.ne.s32.totalorder %s3290_s0, %s2270_s13  ;;  %s16_s10 = int_to_ptr.vmem [resolvable:$true] %s15_s10 }
   0x4   :  { %p2274_p1 = scmp.lt.u32.totalorder %s2270_s13, %s3290_s0 }
   0x6   :  { %p2276_p2 = pnand %p2274_p1, %p2271_p0 }
   0x8   :  { %2279 = shalt.err (!%p2276_p2)
}
   0x9   :  { %s2280_s18 = scalar_lea.vmem %s16_s10, 640  ;;  %p2285_p4 = scmp.lt.s32.totalorder %s16_s10, %s16_s10 }
   0xa   :  { %p2281_p3 = scmp.ne.s32.totalorder %s16_s10, %s2280_s18  ;;  %p2286_p5 = scmp.lt.s32.totalorder %s2280_s18, %s2280_s18 }
   0xc   :  { %p2287_p6 = por %p2286_p5, %p2285_p4 }
   0xe   :  { %p2288_p7 = pnand %p2287_p6, %p2281_p3 }
  0x10   :  { %2291 = shalt.err (!%p2288_p7)
}
  0x11   :  { %s2343_s19 = smov 320   ;;  %s2344_s20 = smov 20  }
  0x12   :  { %21 = dma.hbm_to_vmem [thread:$0]  %s3290_s0, 640, %s16_s10, [#allocation3], %s2343_s19, %s2343_s19, %s2344_s20  }
  0x13   :  { %s2345_s23 = smov [#allocation5]   ;;  %s2292_s27 = scalar_lea.hbm %s3291_s1, 384 }
  0x14   :  { %s27_s24 = sshll.u32 %s2345_s23, 4  ;;  %p2293_p8 = scmp.ne.s32.totalorder %s3291_s1, %s2292_s27  ;;  %s28_s24 = int_to_ptr.vmem [resolvable:$true] %s27_s24 }
  0x15   :  { %p2296_p9 = scmp.lt.u32.totalorder %s2292_s27, %s3291_s1 }
  0x17   :  { %p2298_p10 = pnand %p2296_p9, %p2293_p8 }
  0x19   :  { %2301 = shalt.err (!%p2298_p10)
}
  0x1a   :  { %s2302_s4 = scalar_lea.vmem %s28_s24, 384  ;;  %p2307_p12 = scmp.lt.s32.totalorder %s28_s24, %s28_s24 }
  0x1b   :  { %p2303_p11 = scmp.ne.s32.totalorder %s28_s24, %s2302_s4  ;;  %p2308_p13 = scmp.lt.s32.totalorder %s2302_s4, %s2302_s4 }
  0x1d   :  { %p2309_p0 = por %p2308_p13, %p2307_p12 }
  0x1f   :  { %p2310_p1 = pnand %p2309_p0, %p2303_p11 }
  0x21   :  { %2313 = shalt.err (!%p2310_p1)
}
  0x22   :  { %s2346_s0 = smov 128   ;;  %s2347_s5 = smov 8  }
  0x23   :  { %33 = dma.hbm_to_vmem [thread:$0]  %s3291_s1, 384, %s28_s24, [#allocation6], %s2346_s0, %s2346_s0, %s2347_s5  }
  0x24   :  { %2336 = dma.done.wait [#allocation3], 640  }
  0x25   :  { %2337 = vsyncadd [#allocation3], 4294966656 }
  0x26   :  { %2338 = dma.done.wait [#allocation6], 384  }
  0x27   :  { %2339 = vsyncadd [#allocation6], 4294966912  ;;  %v2415_v0 = vld [vmem:[#allocation2 + $0x10] sm:$0xf]  ;;  %v2417_v1 = vld [vmem:[#allocation2 + $0x14] sm:$0xff]  ;;  %s2348_s1 = smov 127  }
  0x28   :  { %v2419_v2 = vld [vmem:[#allocation2] sm:$0xff]  ;;  %v1698_v3 = vpack.i.bf16 %v2417_v1, %v2415_v0  ;;  %v2431_v6 = vcombine.high %v2417_v1, %v2417_v1  ;;  %v2433_v7 = vld [vmem:[#allocation2 + $0x8] sm:$0xff]  ;;  %s2349_s8 = smov 126   ;;  %s2350_s9 = smov 125   ;;  %vm69_vm0 = vcmask 1039360   ;;  %vm980_vm1 = vcmask 1043456  }
  0x29   :  { %v2425_v4 = vcombine.high %v2419_v2, %v2419_v2  ;;  %v2427_v5 = vld [vmem:[#allocation2 + $0x1c] sm:$0xff]  ;;  %v2437_v8 = vcombine.high %v2433_v7, %v2433_v7  ;;  %v2449_v13 = vld [vmem:[#allocation2 + $0x24] sm:$0xf]  ;;  %s2351_s10 = smov 124   ;;  %s2352_s11 = smov 108   ;;  %vm99_vm2 = vcmask 1031168  }
  0x2a   :  { %1699 = vrot.lane.b32.xlu1 %v1698_v3, %s2348_s1  ;;  %v1713_v10 = vpack.i.bf16 %v2427_v5, %v2431_v6  ;;  %v2447_v12 = vcombine.high %v2427_v5, %v2427_v5  ;;  %s2353_s12 = smov 107   ;;  %s2354_s13 = smov 106   ;;  %v2469_v17 = vpack.i.bf16 %v2431_v6, %v2419_v2  ;;  %v1913_v18 = vpack.i.bf16 %v2431_v6, %v2415_v0 }
  0x2b   :  { %v1703_v9 = vpack.i.bf16 %v2425_v4, %v2419_v2  ;;  %v1708_v11 = vpack.i.bf16 %v2437_v8, %v2433_v7  ;;  %s2355_s14 = smov 105   ;;  %v2456_v15 = vpack.i.bf16 %v2433_v7, %v2425_v4  ;;  %s2356_s15 = smov 104   ;;  %v2463_v16 = vpack.i.bf16 %v2415_v0, %v2437_v8 }
  0x2c   :  { %v1718_v14 = vpack.i.bf16 %v2449_v13, %v2447_v12  ;;  %s2357_s16 = smov 87   ;;  %s2358_s17 = smov 88   ;;  %vm136_vm3 = vcmask 1022976   ;;  %vm165_vm4 = vcmask 1014784   ;;  %vm202_vm5 = vcmask 883712  }
  0x2d   :  { %1704 = vrot.lane.b32.xlu0 %v1703_v9, %s2348_s1  ;;  %s2359_s18 = smov 85   ;;  %s2360_s19 = smov 68   ;;  %vm231_vm6 = vcmask 875520   ;;  %vm268_vm7 = vcmask 867328   ;;  %vm297_vm8 = vcmask 859136   ;;  %vm334_vm9 = vcmask 850944  }
  0x2e   :  { %1714 = vrot.lane.b32.xlu1 %v1713_v10, %s2348_s1  ;;  %s2361_s20 = smov 86   ;;  %s2362_s21 = smov 84   ;;  %vm400_vm10 = vcmask 711680   ;;  %vm363_vm11 = vcmask 719872   ;;  %vm466_vm12 = vcmask 695296   ;;  %vm532_vm13 = vcmask 556032  }
  0x2f   :  { %s2363_s22 = smov 66   ;;  %s2364_s23 = smov 64   ;;  %vm429_vm14 = vcmask 703488   ;;  %vm495_vm15 = vcmask 687104  }
  0x30   :  { %s2365_s24 = smov 67   ;;  %s2366_s25 = smov 65  }
  0x31   :  { %1709 = vrot.lane.b32.xlu0 %v1708_v11, %s2348_s1  ;;  %s2367_s26 = smov 47   ;;  %s2368_s27 = smov 45  }
  0x32   :  { %1724 = vrot.lane.b32.xlu1 %v1703_v9, %s2349_s8  ;;  %s2369_s28 = smov 48   ;;  %s2370_s29 = smov 46  }
  0x33   :  { %s2372_s30 = smov 44   ;;  %s2373_s3 = smov [#allocation7]  }
  0x34   :  { %s1547_s4 = sshll.u32 %s2373_s3, 4  ;;  %s1548_s4 = int_to_ptr.vmem [resolvable:$true] %s1547_s4 }
  0x35   :  { %1719 = vrot.lane.b32.xlu0 %v1718_v14, %s2348_s1  ;;  %s2314_s0 = scalar_lea.vmem %s1548_s4, 3072  ;;  %p2319_p3 = scmp.lt.s32.totalorder %s1548_s4, %s1548_s4 }
  0x36   :  { %1734 = vrot.lane.b32.xlu1 %v1698_v3, %s2349_s8  ;;  %p2315_p2 = scmp.ne.s32.totalorder %s1548_s4, %s2314_s0  ;;  %p2320_p4 = scmp.lt.s32.totalorder %s2314_s0, %s2314_s0 }
  0x38   :  { %p2321_p5 = por %p2320_p4, %p2319_p3 }
  0x39   :  { %1729 = vrot.lane.b32.xlu0 %v1708_v11, %s2349_s8 }
  0x3a   :  { %1744 = vrot.lane.b32.xlu1 %v1718_v14, %s2349_s8  ;;  %p2322_p6 = pnand %p2321_p5, %p2315_p2 }
  0x3d   :  { %1739 = vrot.lane.b32.xlu0 %v1713_v10, %s2349_s8 }
  0x3e   :  { %1754 = vrot.lane.b32.xlu1 %v1708_v11, %s2350_s9 }
  0x41   :  { %1749 = vrot.lane.b32.xlu0 %v1703_v9, %s2350_s9 }
  0x42   :  { %1764 = vrot.lane.b32.xlu1 %v1713_v10, %s2350_s9 }
  0x45   :  { %1759 = vrot.lane.b32.xlu0 %v1698_v3, %s2350_s9 }
  0x46   :  { %1774 = vrot.lane.b32.xlu1 %v1703_v9, %s2351_s10 }
  0x49   :  { %1769 = vrot.lane.b32.xlu0 %v1718_v14, %s2350_s9 }
  0x4a   :  { %1784 = vrot.lane.b32.xlu1 %v1698_v3, %s2351_s10 }
  0x4d   :  { %1779 = vrot.lane.b32.xlu0 %v1708_v11, %s2351_s10 }
  0x4e   :  { %1794 = vrot.lane.b32.xlu1 %v1718_v14, %s2351_s10 }
  0x51   :  { %1789 = vrot.lane.b32.xlu0 %v1713_v10, %s2351_s10 }
  0x52   :  { %1804 = vrot.lane.b32.xlu1 %v1708_v11, %s2352_s11 }
  0x55   :  { %1799 = vrot.lane.b32.xlu0 %v1703_v9, %s2352_s11 }
  0x56   :  { %1814 = vrot.lane.b32.xlu1 %v1713_v10, %s2352_s11 }
  0x59   :  { %1809 = vrot.lane.b32.xlu0 %v1698_v3, %s2352_s11 }
  0x5a   :  { %1824 = vrot.lane.b32.xlu1 %v1703_v9, %s2353_s12 }
  0x5d   :  { %1819 = vrot.lane.b32.xlu0 %v1718_v14, %s2352_s11 }
  0x5e   :  { %1834 = vrot.lane.b32.xlu1 %v1698_v3, %s2353_s12 }
  0x61   :  { %1829 = vrot.lane.b32.xlu0 %v1708_v11, %s2353_s12 }
  0x62   :  { %1844 = vrot.lane.b32.xlu1 %v1718_v14, %s2353_s12 }
  0x65   :  { %1839 = vrot.lane.b32.xlu0 %v1713_v10, %s2353_s12 }
  0x66   :  { %1854 = vrot.lane.b32.xlu1 %v1708_v11, %s2354_s13 }
  0x69   :  { %1849 = vrot.lane.b32.xlu0 %v1703_v9, %s2354_s13 }
  0x6a   :  { %1864 = vrot.lane.b32.xlu1 %v1713_v10, %s2354_s13 }
  0x6d   :  { %1859 = vrot.lane.b32.xlu0 %v1698_v3, %s2354_s13 }
  0x6e   :  { %1874 = vrot.lane.b32.xlu1 %v1703_v9, %s2355_s14 }
  0x71   :  { %1869 = vrot.lane.b32.xlu0 %v1718_v14, %s2354_s13 }
  0x72   :  { %1884 = vrot.lane.b32.xlu1 %v2456_v15, %s2356_s15 }
  0x75   :  { %1879 = vrot.lane.b32.xlu0 %v1708_v11, %s2355_s14 }
  0x76   :  { %1894 = vrot.lane.b32.xlu1 %v2456_v15, %s2357_s16 }
  0x79   :  { %1889 = vrot.lane.b32.xlu0 %v2463_v16, %s2356_s15 }
  0x7a   :  { %1904 = vrot.lane.b32.xlu1 %v2469_v17, %s2356_s15 }
  0x7d   :  { %1899 = vrot.lane.b32.xlu0 %v2463_v16, %s2357_s16 }
  0x7e   :  { %1914 = vrot.lane.b32.xlu1 %v1913_v18, %s2355_s14 }
  0x81   :  { %1909 = vrot.lane.b32.xlu0 %v2469_v17, %s2357_s16 }
  0x82   :  { %1924 = vrot.lane.b32.xlu1 %v2463_v16, %s2358_s17 }
  0x85   :  { %1919 = vrot.lane.b32.xlu0 %v2456_v15, %s2358_s17 }
  0x86   :  { %1934 = vrot.lane.b32.xlu1 %v2456_v15, %s2359_s18 }
  0x89   :  { %1929 = vrot.lane.b32.xlu0 %v2469_v17, %s2358_s17 }
  0x8a   :  { %1944 = vrot.lane.b32.xlu1 %v2456_v15, %s2360_s19 }
  0x8d   :  { %1939 = vrot.lane.b32.xlu0 %v2463_v16, %s2359_s18 }
  0x8e   :  { %1954 = vrot.lane.b32.xlu1 %v2469_v17, %s2359_s18 }
  0x91   :  { %1949 = vrot.lane.b32.xlu0 %v2463_v16, %s2360_s19 }
  0x92   :  { %1964 = vrot.lane.b32.xlu1 %v2456_v15, %s2361_s20 }
  0x95   :  { %1959 = vrot.lane.b32.xlu0 %v2469_v17, %s2360_s19 }
  0x96   :  { %1974 = vrot.lane.b32.xlu1 %v2456_v15, %s2362_s21 }
  0x99   :  { %1969 = vrot.lane.b32.xlu0 %v2463_v16, %s2361_s20 }
  0x9a   :  { %1984 = vrot.lane.b32.xlu1 %v2469_v17, %s2361_s20 }
  0x9c   :  { %v1700_v19 = vpop.permute.xlu1 %1699 }
  0x9d   :  { %1979 = vrot.lane.b32.xlu0 %v2463_v16, %s2362_s21  ;;  %v1701_v27 = vunpack.i.l.bf16 %v1700_v19  ;;  %v1702_v31 = vunpack.i.h.bf16 %v1700_v19 }
  0x9e   :  { %1994 = vrot.lane.b32.xlu1 %v2456_v15, %s2363_s22 }
  0x9f   :  { %v1705_v20 = vpop.permute.xlu0 %1704 }
  0xa0   :  { %v1715_v21 = vpop.permute.xlu1 %1714  ;;  %v1707_v24 = vunpack.i.h.bf16 %v1705_v20  ;;  %v1706_v25 = vunpack.i.l.bf16 %v1705_v20 }
  0xa1   :  { %1989 = vrot.lane.b32.xlu0 %v2469_v17, %s2362_s21  ;;  %v1717_v26 = vunpack.i.h.bf16 %v1715_v21  ;;  %v1716_v32 = vunpack.i.l.bf16 %v1715_v21 }
  0xa2   :  { %2004 = vrot.lane.b32.xlu1 %v2456_v15, %s2364_s23  ;;  %v70_v35 = vsel %vm69_vm0, %v1706_v25, %v1707_v24 }
  0xa3   :  { %v1710_v22 = vpop.permute.xlu0 %1709  ;;  %v86_v34 = vsel %vm69_vm0, %v1716_v32, %v1717_v26  ;;  %v85_v39 = vsel %vm69_vm0, %v1702_v31, %v1716_v32  ;;  %v852_v44 = vrot.slane %v70_v35, 4 }
  0xa4   :  { %v2516_v23 = vpop.permute.xlu1 %1724  ;;  %v1712_v28 = vunpack.i.h.bf16 %v1710_v22  ;;  %v1711_v29 = vunpack.i.l.bf16 %v1710_v22  ;;  %v857_v40 = vrot.slane %v86_v34, 4  ;;  %v856_v49 = vrot.slane %v85_v39, 4 }
  0xa5   :  { %1999 = vrot.lane.b32.xlu0 %v2463_v16, %s2363_s22  ;;  %v1727_v41 = vunpack.i.h.bf16 %v2516_v23  ;;  %v1726_v42 = vunpack.i.l.bf16 %v2516_v23  ;;  %v2551_v54 = vsel %vm980_vm1, %v2419_v2, %v852_v44 }
  0xa6   :  { %2014 = vrot.lane.b32.xlu1 %v2469_v17, %s2363_s22  ;;  %v71_v37 = vsel %vm69_vm0, %v1707_v24, %v1711_v29  ;;  %v73_v38 = vsel %vm69_vm0, %v1712_v28, %v1701_v27  ;;  %v72_v48 = vsel %vm69_vm0, %v1711_v29, %v1712_v28  ;;  %v2555_v56 = vsel %vm980_vm1, %v2431_v6, %v857_v40 }
  0xa7   :  { %v1720_v30 = vpop.permute.xlu0 %1719  ;;  %v853_v46 = vrot.slane %v71_v37, 4  ;;  %v855_v47 = vrot.slane %v73_v38, 4  ;;  %v854_v55 = vrot.slane %v72_v48, 4  ;;  %v100_v59 = vsel %vm99_vm2, %v1726_v42, %v1727_v41 }
  0xa8   :  { %v2522_v33 = vpop.permute.xlu1 %1734  ;;  %v1721_v45 = vunpack.i.l.bf16 %v1720_v30  ;;  %v1722_v50 = vunpack.i.h.bf16 %v1720_v30  ;;  %v2574_v9 = vsel %vm980_vm1, %v2417_v1, %v856_v49 }
  0xa9   :  { %2009 = vrot.lane.b32.xlu0 %v2463_v16, %s2364_s23  ;;  %v982_v58 = vsel %vm980_vm1, %v2425_v4, %v853_v46  ;;  %v2565_v60 = vsel %vm980_vm1, %v2437_v8, %v855_v47  ;;  %v1737_v10 = vunpack.i.h.bf16 %v2522_v33  ;;  %v1736_v11 = vunpack.i.l.bf16 %v2522_v33 }
  0xaa   :  { %2024 = vrot.lane.b32.xlu1 %v2456_v15, %s2365_s24  ;;  %v2558_v57 = vsel %vm69_vm0, %v1717_v26, %v1721_v45  ;;  %v2568_v61 = vsel %vm69_vm0, %v1721_v45, %v1722_v50  ;;  %v2587_v23 = vsel %vm980_vm1, %v2433_v7, %v854_v55  ;;  %vm598_vm0 = vcmask 539648  }
  0xab   :  { %v2530_v36 = vpop.permute.xlu0 %1729  ;;  %v858_v19 = vrot.slane %v2558_v57, 4 }
  0xac   :  { %v2537_v43 = vpop.permute.xlu1 %1744  ;;  %v1731_v52 = vunpack.i.l.bf16 %v2530_v36  ;;  %v1732_v20 = vunpack.i.h.bf16 %v2530_v36 }
  0xad   :  { %2019 = vrot.lane.b32.xlu0 %v2469_v17, %s2364_s23  ;;  %v1747_v38 = vunpack.i.h.bf16 %v2537_v43  ;;  %v1746_v44 = vunpack.i.l.bf16 %v2537_v43 }
  0xae   :  { %2034 = vrot.lane.b32.xlu1 %v2456_v15, %s2366_s25  ;;  %v101_v22 = vsel %vm99_vm2, %v1727_v41, %v1731_v52 }
  0xaf   :  { %v2544_v51 = vpop.permute.xlu0 %1739 }
  0xb0   :  { %v1755_v53 = vpop.permute.xlu1 %1754  ;;  %v1741_v28 = vunpack.i.l.bf16 %v2544_v51  ;;  %v1742_v33 = vunpack.i.h.bf16 %v2544_v51 }
  0xb1   :  { %2029 = vrot.lane.b32.xlu0 %v2463_v16, %s2365_s24  ;;  %v1757_v62 = vunpack.i.h.bf16 %v1755_v53  ;;  %v1756_v63 = vunpack.i.l.bf16 %v1755_v53 }
  0xb2   :  { %2044 = vrot.lane.b32.xlu1 %v2469_v17, %s2365_s24  ;;  %v118_v48 = vsel %vm99_vm2, %v1737_v10, %v1741_v28 }
  0xb3   :  { %v1750_v3 = vpop.permute.xlu0 %1749  ;;  %v139_v32 = vsel %vm136_vm3, %v1756_v63, %v1757_v62 }
  0xb4   :  { %v1752_v14 = vunpack.i.h.bf16 %v1750_v3  ;;  %v1751_v18 = vunpack.i.l.bf16 %v1750_v3  ;;  %v1765_v21 = vpop.permute.xlu1 %1764  ;;  %v870_v47 = vrot.slane %v139_v32, 4  ;;  %v2661_v32 = vsel %vm980_vm1, %v2427_v5, %v858_v19 }
  0xb5   :  { %2039 = vrot.lane.b32.xlu0 %v2463_v16, %s2366_s25  ;;  %v1767_v24 = vunpack.i.h.bf16 %v1765_v21  ;;  %v1766_v25 = vunpack.i.l.bf16 %v1765_v21 }
  0xb6   :  { %v138_v26 = vsel %vm136_vm3, %v1752_v14, %v1756_v63  ;;  %v137_v27 = vsel %vm136_vm3, %v1751_v18, %v1752_v14  ;;  %2054 = vrot.lane.b32.xlu1 %v2456_v15, %s2367_s26  ;;  %v119_v63 = vsel %vm99_vm2, %v1741_v28, %v1742_v33  ;;  %v103_v18 = vsel %vm99_vm2, %v1732_v20, %v1736_v11 }
  0xb7   :  { %v1760_v29 = vpop.permute.xlu0 %1759  ;;  %v869_v30 = vrot.slane %v138_v26, 4  ;;  %v868_v31 = vrot.slane %v137_v27, 4  ;;  %v152_v34 = vsel %vm136_vm3, %v1766_v25, %v1767_v24 }
  0xb8   :  { %v1762_v35 = vunpack.i.h.bf16 %v1760_v29  ;;  %v1761_v37 = vunpack.i.l.bf16 %v1760_v29  ;;  %v873_v39 = vrot.slane %v152_v34, 4  ;;  %v2598_v40 = vpop.permute.xlu1 %1774 }
  0xb9   :  { %2049 = vrot.lane.b32.xlu0 %v2469_v17, %s2366_s25  ;;  %v990_v41 = vsel %vm980_vm1, %v101_v22, %v869_v30  ;;  %v989_v42 = vsel %vm980_vm1, %v100_v59, %v868_v31 }
  0xba   :  { %v151_v45 = vsel %vm136_vm3, %v1762_v35, %v1766_v25  ;;  %v1568_v46 = vpack.c.bf16 %v990_v41, %v982_v58  ;;  %2064 = vrot.lane.b32.xlu1 %v2456_v15, %s2368_s27  ;;  %v1570_v51 = vpack.c.bf16 %v989_v42, %v2551_v54  ;;  %v140_v53 = vsel %vm136_vm3, %v1757_v62, %v1761_v37 }
  0xbb   :  { %v872_v49 = vrot.slane %v151_v45, 4  ;;  %v1770_v50 = vpop.permute.xlu0 %1769  ;;  %v871_v43 = vrot.slane %v140_v53, 4  ;;  %v859_v58 = vrot.slane %v2568_v61, 4  ;;  %v102_v54 = vsel %vm99_vm2, %v1731_v52, %v1732_v20 }
  0xbc   :  { %v1772_v55 = vunpack.i.h.bf16 %v1770_v50  ;;  %v1771_v59 = vunpack.i.l.bf16 %v1770_v50  ;;  %1569 = vmatprep.subr.bf16.mxu0 %v1568_v46  ;;  %v2613_v3 = vpop.permute.xlu1 %1784  ;;  %v2621_v62 = vsel %vm980_vm1, %v119_v63, %v873_v39  ;;  %v991_v21 = vsel %vm980_vm1, %v102_v54, %v870_v47 }
  0xbd   :  { %2059 = vrot.lane.b32.xlu0 %v2463_v16, %s2367_s26  ;;  %1571 = vmatpush1.bf16.msra.mxu0 %v1570_v51  ;;  %v2624_v10 = vsel %vm980_vm1, %v118_v48, %v872_v49  ;;  %v992_v52 = vsel %vm980_vm1, %v103_v18, %v871_v43  ;;  %v1616_v26 = vpack.c.bf16 %v2621_v62, %v2555_v56  ;;  %v1777_v54 = vunpack.i.h.bf16 %v2598_v40  ;;  %v3120_v62 = vld [vmem:[#allocation5 + $0x8] sm:$0xff] }
  0xbe   :  { %v153_v14 = vsel %vm136_vm3, %v1767_v24, %v1771_v59  ;;  %v154_v61 = vsel %vm136_vm3, %v1771_v59, %v1772_v55  ;;  %2074 = vrot.lane.b32.xlu1 %v2469_v17, %s2367_s26  ;;  %v120_v24 = vsel %vm99_vm2, %v1742_v33, %v1746_v44  ;;  %v1592_v27 = vpack.c.bf16 %v992_v52, %v2565_v60 }
  0xbf   :  { %v874_v22 = vrot.slane %v153_v14, 4  ;;  %v875_v25 = vrot.slane %v154_v61, 4  ;;  %v2632_v36 = vpop.permute.xlu0 %1779  ;;  %v121_v20 = vsel %vm99_vm2, %v1746_v44, %v1747_v38  ;;  %v1594_v29 = vpack.c.bf16 %v991_v21, %v2587_v23 }
  0xc0   :  { %v2642_v28 = vpop.permute.xlu1 %1794  ;;  %1593 = vmatprep.subr.bf16.mxu1 %v1592_v27  ;;  %v2655_v60 = vsel %vm980_vm1, %v2447_v12, %v859_v58  ;;  %v2691_v42 = vpack.i.bf16 %v2447_v12, %v2427_v5  ;;  %v1787_v44 = vunpack.i.h.bf16 %v2613_v3  ;;  %v1776_v14 = vunpack.i.l.bf16 %v2598_v40 }
  0xc1   :  { %2069 = vrot.lane.b32.xlu0 %v2463_v16, %s2368_s27  ;;  %v2648_v30 = vsel %vm980_vm1, %v121_v20, %v875_v25  ;;  %v2651_v31 = vsel %vm980_vm1, %v120_v24, %v874_v22  ;;  %1595 = vmatpush1.bf16.msra.mxu1 %v1594_v29  ;;  %v1797_v50 = vunpack.i.h.bf16 %v2642_v28  ;;  %v1796_v51 = vunpack.i.l.bf16 %v2642_v28 }
  0xc2   :  { %2084 = vrot.lane.b32.xlu1 %v2456_v15, %s2369_s28  ;;  %v1786_v21 = vunpack.i.l.bf16 %v2613_v3  ;;  %v1781_v40 = vunpack.i.l.bf16 %v2632_v36  ;;  %v1782_v3 = vunpack.i.h.bf16 %v2632_v36  ;;  %vm664_vm2 = vcmask 523264  }
  0xc3   :  { %v2665_v23 = vpop.permute.xlu0 %1789  ;;  %vm561_vm3 = vcmask 547840   ;;  %v3300_v56 = vpack.c.bf16 %v2648_v30, %v2655_v60 }
  0xc4   :  { %v2671_v35 = vpop.permute.xlu1 %1804  ;;  %v1792_v37 = vunpack.i.h.bf16 %v2665_v23  ;;  %v1791_v38 = vunpack.i.l.bf16 %v2665_v23 }
  0xc5   :  { %2079 = vrot.lane.b32.xlu0 %v2469_v17, %s2368_s27  ;;  %v1806_v22 = vunpack.i.l.bf16 %v2671_v35  ;;  %v1807_v24 = vunpack.i.h.bf16 %v2671_v35 }
  0xc6   :  { %2094 = vrot.lane.b32.xlu1 %v2456_v15, %s2370_s29  ;;  %v2687_v15 = vpack.i.bf16 %v2417_v1, %v2449_v13  ;;  %v3293_v1 = vmov 0.0   ;;  %v185_v5 = vsel %vm165_vm4, %v1791_v38, %v1792_v37  ;;  %v184_v59 = vsel %vm165_vm4, %v1787_v44, %v1791_v38 }
  0xc7   :  { %v1800_v57 = vpop.permute.xlu0 %1799  ;;  %1225 = vmatprep.mubr.f32.mxu0 %v3293_v1  ;;  %1308 = vmatprep.mubr.f32.mxu1 %v3293_v1  ;;  %v186_v29 = vsel %vm165_vm4, %v1792_v37, %v1796_v51 }
  0xc8   :  { %v1815_v19 = vpop.permute.xlu1 %1814  ;;  %v1802_v43 = vunpack.i.h.bf16 %v1800_v57  ;;  %v1801_v61 = vunpack.i.l.bf16 %v1800_v57  ;;  %v187_v57 = vsel %vm165_vm4, %v1796_v51, %v1797_v50 }
  0xc9   :  { %2089 = vrot.lane.b32.xlu0 %v2463_v16, %s2369_s28  ;;  %v1817_v39 = vunpack.i.h.bf16 %v1815_v19  ;;  %v1816_v41 = vunpack.i.l.bf16 %v1815_v19 }
  0xca   :  { %683 = vrot.lane.b32.xlu1 %v2419_v2, %s2369_s28  ;;  %v204_v23 = vsel %vm202_vm5, %v1802_v43, %v1806_v22  ;;  %v203_v19 = vsel %vm202_vm5, %v1801_v61, %v1802_v43 }
  0xcb   :  { %v2683_v17 = vpop.permute.xlu0 %1809  ;;  %v218_v45 = vsel %vm202_vm5, %v1816_v41, %v1817_v39  ;;  %v885_v44 = vrot.slane %v204_v23, 4 }
  0xcc   :  { %v1812_v46 = vunpack.i.h.bf16 %v2683_v17  ;;  %v889_v47 = vrot.slane %v218_v45, 4  ;;  %v2696_v48 = vpop.permute.xlu1 %1824  ;;  %v1811_v38 = vunpack.i.l.bf16 %v2683_v17  ;;  %v167_v45 = vsel %vm165_vm4, %v1777_v54, %v1781_v40 }
  0xcd   :  { %2099 = vrot.lane.b32.xlu0 %v2463_v16, %s2370_s29  ;;  %v1827_v51 = vunpack.i.h.bf16 %v2696_v48  ;;  %v998_v61 = vsel %vm980_vm1, %v167_v45, %v885_v44 }
  0xce   :  { %v217_v49 = vsel %vm202_vm5, %v1812_v46, %v1816_v41  ;;  %817 = vrot.lane.b32.xlu1 %v2425_v4, %s2372_s30  ;;  %v2709_v16 = vsel %vm980_vm1, %v185_v5, %v889_v47  ;;  %v2746_v41 = vsel %vm202_vm5, %v1806_v22, %v1807_v24  ;;  %v884_v46 = vrot.slane %v203_v19, 4 }
  0xcf   :  { %v888_v53 = vrot.slane %v217_v49, 4  ;;  %v1820_v55 = vpop.permute.xlu0 %1819  ;;  %v2756_v5 = vsel %vm165_vm4, %v1782_v3, %v1786_v21  ;;  %v2759_v50 = vsel %vm202_vm5, %v1807_v24, %v1811_v38 }
  0xd0   :  { %v1822_v63 = vunpack.i.h.bf16 %v1820_v55  ;;  %v1821_v58 = vunpack.i.l.bf16 %v1820_v55  ;;  %v2714_v18 = vpop.permute.xlu1 %1834  ;;  %v2766_v55 = vsel %vm165_vm4, %v1781_v40, %v1782_v3  ;;  %v887_v21 = vrot.slane %v2759_v50, 4 }
  0xd1   :  { %749 = vrot.lane.b32.xlu0 %v2419_v2, %s2370_s29  ;;  %v2719_v4 = vsel %vm980_vm1, %v184_v59, %v888_v53  ;;  %v886_v59 = vrot.slane %v2746_v41, 4  ;;  %v1837_v40 = vunpack.i.h.bf16 %v2714_v18 }
  0xd2   :  { %v219_v25 = vsel %vm202_vm5, %v1817_v39, %v1821_v58  ;;  %v220_v52 = vsel %vm202_vm5, %v1821_v58, %v1822_v63  ;;  %821 = vrot.lane.b32.xlu1 %v2437_v8, %s2372_s30  ;;  %vm730_vm5 = vcmask 384000  }
  0xd3   :  { %v890_v27 = vrot.slane %v219_v25, 4  ;;  %v891_v20 = vrot.slane %v220_v52, 4  ;;  %v2729_v28 = vpop.permute.xlu0 %1829 }
  0xd4   :  { %v1845_v35 = vpop.permute.xlu1 %1844 }
  0xd5   :  { %819 = vrot.lane.b32.xlu0 %v2433_v7, %s2372_s30  ;;  %v2740_v8 = vsel %vm980_vm1, %v187_v57, %v891_v20  ;;  %v2743_v39 = vsel %vm980_vm1, %v186_v29, %v890_v27  ;;  %v1847_v36 = vunpack.i.h.bf16 %v1845_v35  ;;  %v1846_v37 = vunpack.i.l.bf16 %v1845_v35 }
  0xd6   :  { %815 = vrot.lane.b32.xlu1 %v2419_v2, %s2372_s30  ;;  %v166_v7 = vsel %vm165_vm4, %v1776_v14, %v1777_v54  ;;  %v1826_v2 = vunpack.i.l.bf16 %v2696_v48  ;;  %v1836_v54 = vunpack.i.l.bf16 %v2714_v18  ;;  %v1832_v14 = vunpack.i.h.bf16 %v2729_v28 }
  0xd7   :  { %v1840_v17 = vpop.permute.xlu0 %1839  ;;  %v2753_v47 = vsel %vm231_vm6, %v1846_v37, %v1847_v36  ;;  %v1831_v48 = vunpack.i.l.bf16 %v2729_v28  ;;  %v997_v52 = vsel %vm980_vm1, %v166_v7, %v884_v46  ;;  %vm3295_vm4 = vcmask 531456  }
  0xd8   :  { %v1842_v49 = vunpack.i.h.bf16 %v1840_v17  ;;  %v1855_v53 = vpop.permute.xlu1 %1854  ;;  %v1841_v24 = vunpack.i.l.bf16 %v1840_v17  ;;  %v232_v28 = vsel %vm231_vm6, %v1826_v2, %v1827_v51  ;;  %v235_v36 = vsel %vm231_vm6, %v1832_v14, %v1836_v54 }
  0xd9   :  { %823 = vrot.lane.b32.xlu0 %v2415_v0, %s2372_s30  ;;  %v1857_v63 = vunpack.i.h.bf16 %v1855_v53  ;;  %v1856_v58 = vunpack.i.l.bf16 %v1855_v53  ;;  %v233_v35 = vsel %vm231_vm6, %v1827_v51, %v1831_v48  ;;  %v234_v53 = vsel %vm231_vm6, %v1831_v48, %v1832_v14 }
  0xda   :  { %v2770_v43 = vsel %vm231_vm6, %v1842_v49, %v1846_v37  ;;  %2109 = vrot.lane.b32.xlu1 %v2687_v15, %s2356_s15  ;;  %v250_v51 = vsel %vm231_vm6, %v1837_v40, %v1841_v24 }
  0xdb   :  { %v1850_v0 = vpop.permute.xlu0 %1849  ;;  %v271_v27 = vsel %vm268_vm7, %v1856_v58, %v1857_v63 }
  0xdc   :  { %v1852_v22 = vunpack.i.h.bf16 %v1850_v0  ;;  %v1851_v25 = vunpack.i.l.bf16 %v1850_v0  ;;  %v1865_v20 = vpop.permute.xlu1 %1864  ;;  %v902_v37 = vrot.slane %v271_v27, 4  ;;  %v251_v0 = vsel %vm231_vm6, %v1841_v24, %v1842_v49 }
  0xdd   :  { %2104 = vrot.lane.b32.xlu0 %v2691_v42, %s2356_s15  ;;  %v1867_v23 = vunpack.i.h.bf16 %v1865_v20  ;;  %v1866_v57 = vunpack.i.l.bf16 %v1865_v20  ;;  %vm3297_vm6 = vcmask 367616  }
  0xde   :  { %v270_v3 = vsel %vm268_vm7, %v1852_v22, %v1856_v58  ;;  %v269_v29 = vsel %vm268_vm7, %v1851_v25, %v1852_v22  ;;  %2119 = vrot.lane.b32.xlu1 %v2687_v15, %s2357_s16  ;;  %v1007_v14 = vsel %vm980_vm1, %v234_v53, %v902_v37 }
  0xdf   :  { %v901_v19 = vrot.slane %v270_v3, 4  ;;  %v900_v38 = vrot.slane %v269_v29, 4  ;;  %v1860_v18 = vpop.permute.xlu0 %1859  ;;  %v284_v44 = vsel %vm268_vm7, %v1866_v57, %v1867_v23 }
  0xe0   :  { %v1862_v17 = vunpack.i.h.bf16 %v1860_v18  ;;  %v1861_v45 = vunpack.i.l.bf16 %v1860_v18  ;;  %v905_v7 = vrot.slane %v284_v44, 4  ;;  %v2792_v46 = vpop.permute.xlu1 %1874 }
  0xe1   :  { %2114 = vrot.lane.b32.xlu0 %v2691_v42, %s2357_s16  ;;  %v1006_v50 = vsel %vm980_vm1, %v233_v35, %v901_v19  ;;  %v1005_v2 = vsel %vm980_vm1, %v232_v28, %v900_v38  ;;  %v999_v19 = vsel %vm980_vm1, %v2766_v55, %v886_v59 }
  0xe2   :  { %v283_v58 = vsel %vm268_vm7, %v1862_v17, %v1866_v57  ;;  %v272_v54 = vsel %vm268_vm7, %v1857_v63, %v1861_v45  ;;  %2129 = vrot.lane.b32.xlu1 %v2687_v15, %s2355_s14  ;;  %v1572_v20 = vpack.c.bf16 %v1006_v50, %v998_v61  ;;  %v1574_v3 = vpack.c.bf16 %v1005_v2, %v997_v52 }
  0xe3   :  { %v904_v22 = vrot.slane %v283_v58, 4  ;;  %v903_v25 = vrot.slane %v272_v54, 4  ;;  %v1870_v27 = vpop.permute.xlu0 %1869  ;;  %v2807_v48 = vsel %vm980_vm1, %v251_v0, %v905_v7  ;;  %v1000_v57 = vsel %vm980_vm1, %v2756_v5, %v887_v21 }
  0xe4   :  { %v1872_v29 = vunpack.i.h.bf16 %v1870_v27  ;;  %v1871_v28 = vunpack.i.l.bf16 %v1870_v27  ;;  %1573 = vmatprep.subr.bf16.mxu0 %v1572_v20  ;;  %v2809_v40 = vpop.permute.xlu1 %1884  ;;  %v1598_v37 = vpack.c.bf16 %v1007_v14, %v999_v19  ;;  %v1877_v45 = vunpack.i.h.bf16 %v2792_v46  ;;  %v2869_v20 = vld [vmem:[#allocation2 + $0x14] sm:$0xff] }
  0xe5   :  { %2124 = vrot.lane.b32.xlu0 %v2691_v42, %s2355_s14  ;;  %v1008_v49 = vsel %vm980_vm1, %v235_v36, %v903_v25  ;;  %v2817_v61 = vsel %vm980_vm1, %v250_v51, %v904_v22  ;;  %1575 = vmatpush1.bf16.msra.mxu0 %v1574_v3  ;;  %v2178_v3 = vpack.i.bf16 %v2869_v20, %v2449_v13 }
  0xe6   :  { %v285_v52 = vsel %vm268_vm7, %v1867_v23, %v1871_v28  ;;  %v286_v24 = vsel %vm268_vm7, %v1871_v28, %v1872_v29  ;;  %2139 = vrot.lane.b32.xlu1 %v2687_v15, %s2358_s17  ;;  %v1596_v36 = vpack.c.bf16 %v1008_v49, %v1000_v57  ;;  %v1876_v29 = vunpack.i.l.bf16 %v2792_v46 }
  0xe7   :  { %v906_v38 = vrot.slane %v285_v52, 4  ;;  %v907_v18 = vrot.slane %v286_v24, 4  ;;  %v2829_v35 = vpop.permute.xlu0 %1879  ;;  %vm3296_vm7 = vcmask 392192  }
  0xe8   :  { %1597 = vmatprep.subr.bf16.mxu1 %v1596_v36  ;;  %v2833_v44 = vpop.permute.xlu1 %1894  ;;  %v1882_v58 = vunpack.i.h.bf16 %v2829_v35  ;;  %v1881_v54 = vunpack.i.l.bf16 %v2829_v35 }
  0xe9   :  { %2134 = vrot.lane.b32.xlu0 %v2691_v42, %s2358_s17  ;;  %v2839_v41 = vsel %vm980_vm1, %v2753_v47, %v907_v18  ;;  %v2843_v5 = vsel %vm980_vm1, %v2770_v43, %v906_v38  ;;  %1599 = vmatpush1.bf16.msra.mxu1 %v1598_v37  ;;  %v1887_v47 = vunpack.i.h.bf16 %v2809_v40  ;;  %v1886_v43 = vunpack.i.l.bf16 %v2809_v40  ;;  %v2879_v40 = vld [vmem:[#allocation2 + $0x1c] sm:$0xff] }
  0xea   :  { %2149 = vrot.lane.b32.xlu1 %v2687_v15, %s2359_s18  ;;  %v1897_v0 = vunpack.i.h.bf16 %v2833_v44  ;;  %v1896_v22 = vunpack.i.l.bf16 %v2833_v44  ;;  %v2883_v49 = vpack.i.bf16 %v2447_v12, %v2879_v40  ;;  %v300_v38 = vsel %vm297_vm8, %v1881_v54, %v1882_v58 }
  0xeb   :  { %v1890_v55 = vpop.permute.xlu0 %1889  ;;  %v336_v27 = vsel %vm334_vm9, %v1886_v43, %v1887_v47  ;;  %v3304_v30 = vpack.c.bf16 %v2839_v41, %v2740_v8 }
  0xec   :  { %v2851_v17 = vpop.permute.xlu1 %1904  ;;  %v1892_v50 = vunpack.i.h.bf16 %v1890_v55  ;;  %v1891_v2 = vunpack.i.l.bf16 %v1890_v55  ;;  %v917_v19 = vrot.slane %v336_v27, 4  ;;  %v402_v18 = vsel %vm400_vm10, %v1896_v22, %v1897_v0 }
  0xed   :  { %2144 = vrot.lane.b32.xlu0 %v2691_v42, %s2359_s18  ;;  %v1906_v13 = vunpack.i.l.bf16 %v2851_v17  ;;  %v933_v23 = vrot.slane %v402_v18, 4 }
  0xee   :  { %2159 = vrot.lane.b32.xlu1 %v2687_v15, %s2360_s19  ;;  %v337_v52 = vsel %vm334_vm9, %v1887_v47, %v1891_v2  ;;  %v338_v24 = vsel %vm334_vm9, %v1891_v2, %v1892_v50 }
  0xef   :  { %v1900_v7 = vpop.permute.xlu0 %1899  ;;  %v918_v47 = vrot.slane %v337_v52, 4 }
  0xf0   :  { %v1902_v53 = vunpack.i.h.bf16 %v1900_v7  ;;  %v1901_v51 = vunpack.i.l.bf16 %v1900_v7  ;;  %v2864_v25 = vpop.permute.xlu1 %1914  ;;  %v919_v7 = vrot.slane %v338_v24, 4 }
  0xf1   :  { %2154 = vrot.lane.b32.xlu0 %v2691_v42, %s2360_s19  ;;  %v1916_v28 = vunpack.i.l.bf16 %v2864_v25 }
  0xf2   :  { %2169 = vrot.lane.b32.xlu1 %v2687_v15, %s2361_s20  ;;  %v404_v57 = vsel %vm400_vm10, %v1901_v51, %v1902_v53  ;;  %v299_v15 = vsel %vm297_vm8, %v1877_v45, %v1881_v54  ;;  %v403_v36 = vsel %vm400_vm10, %v1897_v0, %v1901_v51  ;;  %v335_v54 = vsel %vm334_vm9, %v1906_v13, %v1886_v43 }
  0xf3   :  { %v2877_v14 = vpop.permute.xlu0 %1909  ;;  %v935_v50 = vrot.slane %v404_v57, 4  ;;  %v301_v2 = vsel %vm297_vm8, %v1882_v58, %v1916_v28  ;;  %v934_v51 = vrot.slane %v403_v36, 4  ;;  %v1014_v58 = vsel %vm980_vm1, %v299_v15, %v917_v19 }
  0xf4   :  { %v1925_v35 = vpop.permute.xlu1 %1924  ;;  %v1911_v37 = vunpack.i.l.bf16 %v2877_v14  ;;  %v1016_v13 = vsel %vm980_vm1, %v301_v2, %v919_v7  ;;  %v916_v57 = vrot.slane %v335_v54, 4  ;;  %v1912_v8 = vunpack.i.h.bf16 %v2877_v14 }
  0xf5   :  { %2164 = vrot.lane.b32.xlu0 %v2691_v42, %s2361_s20  ;;  %v1927_v44 = vunpack.i.h.bf16 %v1925_v35  ;;  %v1926_v55 = vunpack.i.l.bf16 %v1925_v35 }
  0xf6   :  { %2179 = vrot.lane.b32.xlu1 %v2178_v3, %s2362_s21  ;;  %v401_v28 = vsel %vm400_vm10, %v1911_v37, %v1896_v22  ;;  %v1015_v22 = vsel %vm980_vm1, %v300_v38, %v918_v47 }
  0xf7   :  { %v1920_v53 = vpop.permute.xlu0 %1919  ;;  %v367_v27 = vsel %vm363_vm11, %v1926_v55, %v1927_v44  ;;  %v932_v37 = vrot.slane %v401_v28, 4 }
  0xf8   :  { %v1922_v21 = vunpack.i.h.bf16 %v1920_v53  ;;  %v1921_v59 = vunpack.i.l.bf16 %v1920_v53  ;;  %v2902_v0 = vpop.permute.xlu1 %1934  ;;  %v1024_v52 = vsel %vm980_vm1, %v367_v27, %v935_v50  ;;  %v2930_v50 = vld [vmem:[#allocation2 + $0x24] sm:$0xf] }
  0xf9   :  { %2174 = vrot.lane.b32.xlu0 %v2691_v42, %s2362_s21  ;;  %v1600_v35 = vpack.c.bf16 %v1024_v52, %v1016_v13  ;;  %v2208_v2 = vpack.i.bf16 %v2869_v20, %v2930_v50 }
  0xfa   :  { %v366_v24 = vsel %vm363_vm11, %v1922_v21, %v1926_v55  ;;  %v365_v43 = vsel %vm363_vm11, %v1921_v59, %v1922_v21  ;;  %2189 = vrot.lane.b32.xlu1 %v2178_v3, %s2363_s22  ;;  %v298_v55 = vsel %vm297_vm8, %v1876_v29, %v1877_v45  ;;  %v1937_v45 = vunpack.i.h.bf16 %v2902_v0 }
  0xfb   :  { %v2913_v18 = vpop.permute.xlu0 %1929  ;;  %v1022_v42 = vsel %vm980_vm1, %v365_v43, %v933_v23  ;;  %v1023_v36 = vsel %vm980_vm1, %v366_v24, %v934_v51  ;;  %1601 = vmatprep.subr.bf16.mxu1 %v1600_v35  ;;  %v1013_v38 = vsel %vm980_vm1, %v298_v55, %v916_v57 }
  0xfc   :  { %v1931_v19 = vunpack.i.l.bf16 %v2913_v18  ;;  %v1576_v15 = vpack.c.bf16 %v1022_v42, %v1014_v58  ;;  %v2919_v21 = vpop.permute.xlu1 %1944  ;;  %v1602_v44 = vpack.c.bf16 %v1023_v36, %v1015_v22 }
  0xfd   :  { %2184 = vrot.lane.b32.xlu0 %v2883_v49, %s2363_s22  ;;  %v1947_v29 = vunpack.i.h.bf16 %v2919_v21  ;;  %v1946_v54 = vunpack.i.l.bf16 %v2919_v21 }
  0xfe   :  { %v364_v23 = vsel %vm363_vm11, %v1931_v19, %v1921_v59  ;;  %1577 = vmatprep.subr.bf16.mxu0 %v1576_v15  ;;  %1603 = vmatpush1.bf16.msra.mxu1 %v1602_v44 }
  0xff   :  { %2199 = vrot.lane.b32.xlu1 %v2178_v3, %s2364_s23  ;;  %v1940_v7 = vpop.permute.xlu0 %1939  ;;  %v1021_v47 = vsel %vm980_vm1, %v364_v23, %v932_v37  ;;  %v1936_v3 = vunpack.i.l.bf16 %v2902_v0  ;;  %v534_v28 = vsel %vm532_vm13, %v1946_v54, %v1947_v29 }
 0x100   :  { %v1578_v53 = vpack.c.bf16 %v1021_v47, %v1013_v38  ;;  %v2934_v46 = vpop.permute.xlu1 %1954  ;;  %v1941_v24 = vunpack.i.l.bf16 %v1940_v7  ;;  %v1942_v43 = vunpack.i.h.bf16 %v1940_v7  ;;  %v965_v15 = vrot.slane %v534_v28, 4 }
 0x101   :  { %2194 = vrot.lane.b32.xlu0 %v2883_v49, %s2364_s23  ;;  %v468_v0 = vsel %vm466_vm12, %v1936_v3, %v1937_v45  ;;  %v1956_v38 = vunpack.i.l.bf16 %v2934_v46 }
 0x102   :  { %1579 = vmatpush1.bf16.msra.mxu0 %v1578_v53  ;;  %v949_v19 = vrot.slane %v468_v0, 4  ;;  %v469_v21 = vsel %vm466_vm12, %v1937_v45, %v1941_v24  ;;  %v470_v7 = vsel %vm466_vm12, %v1941_v24, %v1942_v43 }
 0x103   :  { %2209 = vrot.lane.b32.xlu1 %v2208_v2, %s2365_s24  ;;  %v1950_v59 = vpop.permute.xlu0 %1949  ;;  %v950_v28 = vrot.slane %v469_v21, 4  ;;  %v467_v21 = vsel %vm466_vm12, %v1956_v38, %v1936_v3 }
 0x104   :  { %v2943_v27 = vpop.permute.xlu1 %1964  ;;  %v1952_v57 = vunpack.i.h.bf16 %v1950_v59  ;;  %v1951_v35 = vunpack.i.l.bf16 %v1950_v59 }
 0x105   :  { %2204 = vrot.lane.b32.xlu0 %v2883_v49, %s2365_s24  ;;  %v1967_v51 = vunpack.i.h.bf16 %v2943_v27  ;;  %v1966_v52 = vunpack.i.l.bf16 %v2943_v27 }
 0x106   :  { %v535_v59 = vsel %vm532_vm13, %v1947_v29, %v1951_v35  ;;  %v536_v27 = vsel %vm532_vm13, %v1951_v35, %v1952_v57 }
 0x107   :  { %2219 = vrot.lane.b32.xlu1 %v2208_v2, %s2366_s25  ;;  %v2950_v58 = vpop.permute.xlu0 %1959  ;;  %v431_v22 = vsel %vm429_vm14, %v1966_v52, %v1967_v51  ;;  %v966_v1 = vrot.slane %v535_v59, 4 }
 0x108   :  { %v1975_v13 = vpop.permute.xlu1 %1974  ;;  %v1961_v45 = vunpack.i.l.bf16 %v2950_v58  ;;  %v1030_v0 = vsel %vm980_vm1, %v431_v22, %v949_v19  ;;  %v967_v19 = vrot.slane %v536_v27, 4 }
 0x109   :  { %2214 = vrot.lane.b32.xlu0 %v2883_v49, %s2366_s25  ;;  %v1977_v42 = vunpack.i.h.bf16 %v1975_v13  ;;  %v1976_v36 = vunpack.i.l.bf16 %v1975_v13  ;;  %v2248_v13 = vpack.i.bf16 %v2930_v50, %v2447_v12 }
 0x10b   :  { %2229 = vrot.lane.b32.xlu1 %v2208_v2, %s2367_s26  ;;  %v1970_v37 = vpop.permute.xlu0 %1969  ;;  %v497_v44 = vsel %vm495_vm15, %v1976_v36, %v1977_v42 }
 0x10c   :  { %v1972_v55 = vunpack.i.h.bf16 %v1970_v37  ;;  %v1971_v23 = vunpack.i.l.bf16 %v1970_v37  ;;  %v2962_v47 = vpop.permute.xlu1 %1984  ;;  %v1038_v53 = vsel %vm980_vm1, %v497_v44, %v965_v15  ;;  %v2243_v37 = vpack.i.bf16 %v2879_v40, %v2431_v6 }
 0x10d   :  { %2224 = vrot.lane.b32.xlu0 %v2883_v49, %s2367_s26  ;;  %v1580_v43 = vpack.c.bf16 %v1038_v53, %v1030_v0  ;;  %v1986_v29 = vunpack.i.l.bf16 %v2962_v47  ;;  %v951_v44 = vrot.slane %v470_v7, 4  ;;  %v533_v53 = vsel %vm532_vm13, %v1961_v45, %v1946_v54 }
 0x10e   :  { %v433_v15 = vsel %vm429_vm14, %v1971_v23, %v1972_v55  ;;  %v432_v22 = vsel %vm429_vm14, %v1967_v51, %v1971_v23  ;;  %v964_v27 = vrot.slane %v533_v53, 4 }
 0x10f   :  { %2239 = vrot.lane.b32.xlu1 %v2208_v2, %s2368_s27  ;;  %v1980_v24 = vpop.permute.xlu0 %1979  ;;  %1581 = vmatprep.subr.bf16.mxu0 %v1580_v43  ;;  %v1032_v51 = vsel %vm980_vm1, %v433_v15, %v951_v44  ;;  %v1031_v54 = vsel %vm980_vm1, %v432_v22, %v950_v28 }
 0x110   :  { %v1982_v57 = vunpack.i.h.bf16 %v1980_v24  ;;  %v1981_v35 = vunpack.i.l.bf16 %v1980_v24  ;;  %v2979_v2 = vpop.permute.xlu1 %1994 }
 0x111   :  { %2234 = vrot.lane.b32.xlu0 %v2883_v49, %s2368_s27  ;;  %v430_v49 = vsel %vm429_vm14, %v1986_v29, %v1966_v52 }
 0x112   :  { %v498_v55 = vsel %vm495_vm15, %v1977_v42, %v1981_v35  ;;  %v499_v0 = vsel %vm495_vm15, %v1981_v35, %v1982_v57  ;;  %v948_v42 = vrot.slane %v467_v21, 4 }
 0x113   :  { %2249 = vrot.lane.b32.xlu1 %v2248_v13, %s2369_s28  ;;  %v2988_v7 = vpop.permute.xlu0 %1989  ;;  %v1040_v23 = vsel %vm980_vm1, %v499_v0, %v967_v19  ;;  %v1039_v59 = vsel %vm980_vm1, %v498_v55, %v966_v1 }
 0x114   :  { %v1991_v3 = vunpack.i.l.bf16 %v2988_v7  ;;  %v1604_v38 = vpack.c.bf16 %v1040_v23, %v1032_v51  ;;  %v2996_v45 = vpop.permute.xlu1 %2004  ;;  %v1606_v24 = vpack.c.bf16 %v1039_v59, %v1031_v54  ;;  %v1029_v52 = vsel %vm980_vm1, %v430_v49, %v948_v42 }
 0x115   :  { %2244 = vrot.lane.b32.xlu0 %v2243_v37, %s2369_s28  ;;  %v2007_v35 = vunpack.i.h.bf16 %v2996_v45  ;;  %v2006_v44 = vunpack.i.l.bf16 %v2996_v45 }
 0x116   :  { %v496_v43 = vsel %vm495_vm15, %v1991_v3, %v1976_v36  ;;  %1605 = vmatprep.subr.bf16.mxu1 %v1604_v38  ;;  %v1997_v36 = vunpack.i.h.bf16 %v2979_v2 }
 0x117   :  { %2259 = vrot.lane.b32.xlu1 %v2248_v13, %s2370_s29  ;;  %v2000_v1 = vpop.permute.xlu0 %1999  ;;  %1607 = vmatpush1.bf16.msra.mxu1 %v1606_v24  ;;  %v1037_v15 = vsel %vm980_vm1, %v496_v43, %v964_v27  ;;  %v1996_v13 = vunpack.i.l.bf16 %v2979_v2  ;;  %v666_v2 = vsel %vm664_vm2, %v2006_v44, %v2007_v35 }
 0x118   :  { %v1582_v29 = vpack.c.bf16 %v1037_v15, %v1029_v52  ;;  %v3003_v28 = vpop.permute.xlu1 %2014  ;;  %v2001_v55 = vunpack.i.l.bf16 %v2000_v1  ;;  %v2002_v0 = vunpack.i.h.bf16 %v2000_v1  ;;  %v1062_v54 = vrot.slane %v666_v2, 4 }
 0x119   :  { %2254 = vrot.lane.b32.xlu0 %v2243_v37, %s2370_s29  ;;  %v600_v53 = vsel %vm598_vm0, %v1996_v13, %v1997_v36  ;;  %v2016_v1 = vunpack.i.l.bf16 %v3003_v28 }
 0x11a   :  { %1583 = vmatpush1.bf16.msra.mxu0 %v1582_v29  ;;  %v1046_v38 = vrot.slane %v600_v53, 4  ;;  %v601_v27 = vsel %vm598_vm0, %v1997_v36, %v2001_v55 }
 0x11b   :  { %768 = vrot.lane.b32.xlu1 %v2869_v20, %s2370_s29  ;;  %v2010_v57 = vpop.permute.xlu0 %2009 }
 0x11c   :  { %v2025_v19 = vpop.permute.xlu1 %2024  ;;  %v2012_v23 = vunpack.i.h.bf16 %v2010_v57  ;;  %v2011_v59 = vunpack.i.l.bf16 %v2010_v57 }
 0x11d   :  { %702 = vrot.lane.b32.xlu0 %v2869_v20, %s2369_s28  ;;  %v2027_v37 = vunpack.i.h.bf16 %v2025_v19  ;;  %v2026_v22 = vunpack.i.l.bf16 %v2025_v19  ;;  %v1047_v19 = vrot.slane %v601_v27, 4 }
 0x11e   :  { %v667_v29 = vsel %vm664_vm2, %v2007_v35, %v2011_v59 }
 0x11f   :  { %v3014_v21 = vpop.permute.xlu0 %2019  ;;  %838 = vrot.lane.b32.xlu1 %v2879_v40, %s2372_s30  ;;  %v563_v40 = vsel %vm561_vm3, %v2026_v22, %v2027_v37  ;;  %v1063_v34 = vrot.slane %v667_v29, 4 }
 0x120   :  { %v2035_v51 = vpop.permute.xlu1 %2034  ;;  %v2021_v57 = vunpack.i.l.bf16 %v3014_v21  ;;  %v1110_v36 = vsel %vm980_vm1, %v563_v40, %v1046_v38 }
 0x121   :  { %836 = vrot.lane.b32.xlu0 %v2431_v6, %s2372_s30  ;;  %v2037_v49 = vunpack.i.h.bf16 %v2035_v51  ;;  %v2036_v3 = vunpack.i.l.bf16 %v2035_v51  ;;  %v602_v6 = vsel %vm598_vm0, %v2001_v55, %v2002_v0 }
 0x122   :  { %v665_v38 = vsel %vm664_vm2, %v2021_v57, %v2006_v44 }
 0x123   :  { %v2030_v42 = vpop.permute.xlu0 %2029  ;;  %842 = vrot.lane.b32.xlu1 %v2930_v50, %s2372_s30  ;;  %v629_v45 = vsel %vm3295_vm4, %v2036_v3, %v2037_v49  ;;  %v668_v50 = vsel %vm664_vm2, %v2011_v59, %v2012_v23  ;;  %v599_v59 = vsel %vm598_vm0, %v2016_v1, %v1996_v13  ;;  %v1061_v1 = vrot.slane %v665_v38, 4 }
 0x124   :  { %v2032_v24 = vunpack.i.h.bf16 %v2030_v42  ;;  %v2031_v43 = vunpack.i.l.bf16 %v2030_v42  ;;  %v3029_v52 = vpop.permute.xlu1 %2044  ;;  %v1118_v15 = vsel %vm980_vm1, %v629_v45, %v1062_v54  ;;  %v1064_v54 = vrot.slane %v668_v50, 4 }
 0x125   :  { %840 = vrot.lane.b32.xlu0 %v2447_v12, %s2372_s30  ;;  %v1584_v2 = vpack.c.bf16 %v1118_v15, %v1110_v36  ;;  %v2046_v0 = vunpack.i.l.bf16 %v3029_v52  ;;  %v1048_v12 = vrot.slane %v602_v6, 4  ;;  %v1045_v44 = vrot.slane %v599_v59, 4 }
 0x126   :  { %v565_v55 = vsel %vm561_vm3, %v2031_v43, %v2032_v24  ;;  %v564_v35 = vsel %vm561_vm3, %v2027_v37, %v2031_v43 }
 0x127   :  { %v2040_v53 = vpop.permute.xlu0 %2039  ;;  %1585 = vmatprep.subr.bf16.mxu0 %v1584_v2  ;;  %v1112_v24 = vsel %vm980_vm1, %v565_v55, %v1048_v12  ;;  %v562_v6 = vsel %vm561_vm3, %v2046_v0, %v2026_v22  ;;  %v1111_v13 = vsel %vm980_vm1, %v564_v35, %v1047_v19 }
 0x128   :  { %v2042_v51 = vunpack.i.h.bf16 %v2040_v53  ;;  %v2041_v42 = vunpack.i.l.bf16 %v2040_v53  ;;  %v3041_v23 = vpop.permute.xlu1 %2054  ;;  %v1109_v36 = vsel %vm980_vm1, %v562_v6, %v1045_v44 }
 0x129   :  { %834 = vrot.lane.b32.xlu0 %v2869_v20, %s2372_s30  ;;  %v2057_v19 = vunpack.i.h.bf16 %v3041_v23  ;;  %v2056_v55 = vunpack.i.l.bf16 %v3041_v23 }
 0x12a   :  { %v630_v40 = vsel %vm3295_vm4, %v2037_v49, %v2041_v42  ;;  %v631_v27 = vsel %vm3295_vm4, %v2041_v42, %v2042_v51 }
 0x12b   :  { %v3049_v45 = vpop.permute.xlu0 %2049  ;;  %v1120_v37 = vsel %vm980_vm1, %v631_v27, %v1064_v54  ;;  %v1119_v43 = vsel %vm980_vm1, %v630_v40, %v1063_v34  ;;  %v732_v35 = vsel %vm730_vm5, %v2056_v55, %v2057_v19 }
 0x12c   :  { %v2051_v20 = vunpack.i.l.bf16 %v3049_v45  ;;  %v1608_v15 = vpack.c.bf16 %v1120_v37, %v1112_v24  ;;  %v2065_v49 = vpop.permute.xlu1 %2064  ;;  %v1610_v29 = vpack.c.bf16 %v1119_v43, %v1111_v13 }
 0x12d   :  { %v2067_v0 = vunpack.i.h.bf16 %v2065_v49  ;;  %v2066_v51 = vunpack.i.l.bf16 %v2065_v49 }
 0x12e   :  { %v628_v50 = vsel %vm3295_vm4, %v2051_v20, %v2036_v3  ;;  %1609 = vmatprep.subr.bf16.mxu1 %v1608_v15  ;;  %vm759_vm4 = vcmask 375808   ;;  %v1078_v15 = vrot.slane %v732_v35, 4 }
 0x12f   :  { %v2060_v57 = vpop.permute.xlu0 %2059  ;;  %1611 = vmatpush1.bf16.msra.mxu1 %v1610_v29  ;;  %v1117_v34 = vsel %vm980_vm1, %v628_v50, %v1061_v1  ;;  %v798_v59 = vsel %vm3297_vm6, %v2066_v51, %v2067_v0 }
 0x130   :  { %v1586_v53 = vpack.c.bf16 %v1117_v34, %v1109_v36  ;;  %v3060_v22 = vpop.permute.xlu1 %2074  ;;  %v2061_v38 = vunpack.i.l.bf16 %v2060_v57  ;;  %v2062_v40 = vunpack.i.h.bf16 %v2060_v57  ;;  %v1094_v13 = vrot.slane %v798_v59, 4 }
 0x131   :  { %v2076_v27 = vunpack.i.l.bf16 %v3060_v22 }
 0x132   :  { %1587 = vmatpush1.bf16.msra.mxu0 %v1586_v53  ;;  %v733_v49 = vsel %vm730_vm5, %v2057_v19, %v2061_v38  ;;  %v734_v36 = vsel %vm730_vm5, %v2061_v38, %v2062_v40 }
 0x133   :  { %v2070_v2 = vpop.permute.xlu0 %2069  ;;  %v1079_v33 = vrot.slane %v733_v49, 4 }
 0x134   :  { %v2085_v3 = vpop.permute.xlu1 %2084  ;;  %v2072_v24 = vunpack.i.h.bf16 %v2070_v2  ;;  %v2071_v37 = vunpack.i.l.bf16 %v2070_v2 }
 0x135   :  { %v2087_v42 = vunpack.i.h.bf16 %v2085_v3  ;;  %v2086_v12 = vunpack.i.l.bf16 %v2085_v3  ;;  %v731_v3 = vsel %vm730_vm5, %v2076_v27, %v2056_v55 }
 0x136   :  { %v799_v35 = vsel %vm3297_vm6, %v2067_v0, %v2071_v37  ;;  %v800_v59 = vsel %vm3297_vm6, %v2071_v37, %v2072_v24 }
 0x137   :  { %v3064_v54 = vpop.permute.xlu0 %2079  ;;  %v695_v43 = vsel %vm3296_vm7, %v2086_v12, %v2087_v42  ;;  %v1096_v55 = vrot.slane %v800_v59, 4 }
 0x138   :  { %v2095_v23 = vpop.permute.xlu1 %2094  ;;  %v2081_v44 = vunpack.i.l.bf16 %v3064_v54  ;;  %v1126_v53 = vsel %vm980_vm1, %v695_v43, %v1078_v15  ;;  %v1080_v43 = vrot.slane %v734_v36, 4  ;;  %v1077_v15 = vrot.slane %v731_v3, 4 }
 0x139   :  { %v2097_v6 = vunpack.i.h.bf16 %v2095_v23  ;;  %v2096_v20 = vunpack.i.l.bf16 %v2095_v23 }
 0x13a   :  { %v797_v19 = vsel %vm3297_vm6, %v2081_v44, %v2066_v51  ;;  %vm1149_vm6 = vcmask 1044480  }
 0x13b   :  { %v2090_v1 = vpop.permute.xlu0 %2089  ;;  %v761_v29 = vsel %vm759_vm4, %v2096_v20, %v2097_v6  ;;  %v1093_v0 = vrot.slane %v797_v19, 4 }
 0x13c   :  { %v2092_v50 = vunpack.i.h.bf16 %v2090_v1  ;;  %v2091_v57 = vunpack.i.l.bf16 %v2090_v1  ;;  %v684_v34 = vpop.permute.xlu1 %683  ;;  %v1134_v2 = vsel %vm980_vm1, %v761_v29, %v1094_v13  ;;  %v1095_v13 = vrot.slane %v799_v35, 4  ;;  %v3096_v35 = vld [vmem:[#allocation5] sm:$0xff] }
 0x13d   :  { %v1588_v23 = vpack.c.bf16 %v1134_v2, %v1126_v53  ;;  %v694_v24 = vsel %vm3296_vm7, %v684_v34, %v2086_v12 }
 0x13e   :  { %v696_v1 = vsel %vm3296_vm7, %v2087_v42, %v2091_v57  ;;  %v697_v38 = vsel %vm3296_vm7, %v2091_v57, %v2092_v50  ;;  %v1125_v53 = vsel %vm980_vm1, %v694_v24, %v1077_v15  ;;  %vm825_vm7 = vcmask 359424  }
 0x13f   :  { %v2100_v63 = vpop.permute.xlu0 %2099  ;;  %1589 = vmatprep.subr.bf16.mxu0 %v1588_v23  ;;  %v1128_v42 = vsel %vm980_vm1, %v697_v38, %v1080_v43  ;;  %v3298_v15 = vpack.c.bf16 %v2624_v10, %v2574_v9  ;;  %v3301_v9 = vpack.c.bf16 %v2651_v31, %v2661_v32  ;;  %v3302_v10 = vmov 0.0  }
 0x140   :  { %v2102_v40 = vunpack.i.h.bf16 %v2100_v63  ;;  %v2101_v11 = vunpack.i.l.bf16 %v2100_v63  ;;  %v818_v27 = vpop.permute.xlu1 %817  ;;  %v1127_v63 = vsel %vm980_vm1, %v696_v1, %v1079_v33 }
 0x142   :  { %v762_v37 = vsel %vm759_vm4, %v2097_v6, %v2101_v11  ;;  %v763_v51 = vsel %vm759_vm4, %v2101_v11, %v2102_v40 }
 0x143   :  { %v750_v44 = vpop.permute.xlu0 %749  ;;  %v1136_v49 = vsel %vm980_vm1, %v763_v51, %v1096_v55  ;;  %v1135_v29 = vsel %vm980_vm1, %v762_v37, %v1095_v13  ;;  %v3299_v55 = vpack.c.bf16 %v2807_v48, %v2709_v16  ;;  %v1907_v16 = vunpack.i.h.bf16 %v2851_v17 }
 0x144   :  { %v760_v50 = vsel %vm759_vm4, %v750_v44, %v2096_v20  ;;  %v1612_v57 = vpack.c.bf16 %v1136_v49, %v1128_v42  ;;  %v1614_v36 = vpack.c.bf16 %v1135_v29, %v1127_v63  ;;  %v822_v6 = vpop.permute.xlu1 %821  ;;  %v3303_v48 = vpack.c.bf16 %v2817_v61, %v2719_v4  ;;  %v3138_v4 = vld [vmem:[#allocation5 + $0x10] sm:$0xff] }
 0x145   :  { %v1133_v12 = vsel %vm980_vm1, %v760_v50, %v1093_v0  ;;  %v1917_v61 = vunpack.i.h.bf16 %v2864_v25  ;;  %v3305_v51 = vpack.c.bf16 %v2843_v5, %v2743_v39  ;;  %v1932_v29 = vunpack.i.h.bf16 %v2913_v18 }
 0x146   :  { %1613 = vmatprep.subr.bf16.mxu1 %v1612_v57  ;;  %v1590_v11 = vpack.c.bf16 %v1133_v12, %v1125_v53 }
 0x147   :  { %v820_v34 = vpop.permute.xlu0 %819  ;;  %1615 = vmatpush1.bf16.msra.mxu1 %v1614_v36 }
 0x148   :  { %v827_v2 = vsel %vm825_vm7, %v818_v27, %v820_v34  ;;  %1591 = vmatpush1.bf16.msra.mxu0 %v1590_v11  ;;  %v816_v3 = vpop.permute.xlu1 %815  ;;  %v828_v59 = vsel %vm825_vm7, %v820_v34, %v822_v6 }
 0x149   :  { %v1142_v33 = vsel %vm980_vm1, %v827_v2, 1.0  ;;  %v826_v20 = vsel %vm825_vm7, %v816_v3, %v818_v27  ;;  %v1143_v43 = vsel %vm980_vm1, %v828_v59, 1.0 }
 0x14a   :  { %1560 = vmatprep.subr.msk.mxu0 %vm1149_vm6, %v1142_v33  ;;  %v1141_v23 = vsel %vm980_vm1, %v826_v20, 1.0 }
 0x14b   :  { %v824_v19 = vpop.permute.xlu0 %823 }
 0x14c   :  { %v829_v1 = vsel %vm825_vm7, %v822_v6, %v824_v19  ;;  %1561 = vmatpush1.msk.msra.mxu0 %vm1149_vm6, %v1141_v23  ;;  %v2110_v40 = vpop.permute.xlu1 %2109 }
 0x14d   :  { %v1144_v38 = vsel %vm980_vm1, %v829_v1, 1.0  ;;  %1617 = vmatprep.subr.bf16.mxu0 %v1616_v26  ;;  %1226 = vmatmul.mubr.f32.vlgmr.msra.gmra.mrb[0].mxu0 %v3096_v35  ;;  %v2112_v27 = vunpack.i.h.bf16 %v2110_v40  ;;  %v2111_v24 = vunpack.i.l.bf16 %v2110_v40 }
 0x14e   :  { %1562 = vmatprep.subr.msk.mxu1 %vm1149_vm6, %v1144_v38  ;;  %1619 = vmatpush1.bf16.msra.mxu0 %v3298_v15 }
 0x14f   :  { %v2105_v13 = vpop.permute.xlu0 %2104  ;;  %1563 = vmatpush1.msk.msra.mxu1 %vm1149_vm6, %v1143_v43  ;;  %1621 = vmatprep.subr.bf16.mxu0 %v3299_v55  ;;  %v349_v31 = vsel %vm334_vm9, %v2112_v27, %v1907_v16 }
 0x150   :  { %1641 = vmatprep.subr.bf16.mxu1 %v3300_v56  ;;  %1309 = vmatmul.mubr.f32.vlgmr.msra.gmra.mrb[0].mxu1 %v3096_v35  ;;  %v2106_v26 = vunpack.i.l.bf16 %v2105_v13  ;;  %v2120_v0 = vpop.permute.xlu1 %2119  ;;  %v2107_v32 = vunpack.i.h.bf16 %v2105_v13  ;;  %v920_v50 = vrot.slane %v349_v31, 4 }
 0x151   :  { %1643 = vmatpush1.bf16.msra.mxu1 %v3301_v9  ;;  %1231 = vmatprep.mubr.f32.mxu0 %v3302_v10  ;;  %v2122_v37 = vunpack.i.h.bf16 %v2120_v0  ;;  %v2121_v44 = vunpack.i.l.bf16 %v2120_v0 }
 0x152   :  { %1623 = vmatpush1.bf16.msra.mxu0 %v3303_v48  ;;  %1645 = vmatprep.subr.bf16.mxu1 %v3304_v30  ;;  %v350_v41 = vsel %vm334_vm9, %v1907_v16, %v2106_v26  ;;  %v352_v25 = vsel %vm334_vm9, %v2107_v32, %v2111_v24  ;;  %v351_v3 = vsel %vm334_vm9, %v2106_v26, %v2107_v32 }
 0x153   :  { %v2115_v60 = vpop.permute.xlu0 %2114  ;;  %1314 = vmatprep.mubr.f32.mxu1 %v3302_v10  ;;  %1232 = vmatmul.mubr.f32.gmra.mrb[2].mxu0 %v3120_v62  ;;  %v415_v14 = vsel %vm400_vm10, %v2122_v37, %v1912_v8  ;;  %v921_v5 = vrot.slane %v350_v41, 4  ;;  %v923_v0 = vrot.slane %v352_v25, 4  ;;  %v922_v41 = vrot.slane %v351_v3, 4 }
 0x154   :  { %1315 = vmatmul.mubr.f32.gmra.mrb[2].mxu1 %v3120_v62  ;;  %1237 = vmatprep.mubr.f32.mxu0 %v3302_v10  ;;  %v2130_v17 = vpop.permute.xlu1 %2129  ;;  %v2117_v42 = vunpack.i.h.bf16 %v2115_v60  ;;  %v2116_v49 = vunpack.i.l.bf16 %v2115_v60  ;;  %v936_v20 = vrot.slane %v415_v14, 4 }
 0x155   :  { %1647 = vmatpush1.bf16.msra.mxu1 %v3305_v51  ;;  %1320 = vmatprep.mubr.f32.mxu1 %v3302_v10  ;;  %v2132_v63 = vunpack.i.h.bf16 %v2130_v17  ;;  %v2131_v53 = vunpack.i.l.bf16 %v2130_v17 }
 0x156   :  { %v418_v11 = vsel %vm400_vm10, %v2117_v42, %v2121_v44  ;;  %v416_v34 = vsel %vm400_vm10, %v1912_v8, %v2116_v49  ;;  %v417_v1 = vsel %vm400_vm10, %v2116_v49, %v2117_v42  ;;  %v1957_v49 = vunpack.i.h.bf16 %v2934_v46 }
 0x157   :  { %v2125_v57 = vpop.permute.xlu0 %2124  ;;  %1238 = vmatmul.mubr.f32.gmra.mrb[4].mxu0 %v3138_v4  ;;  %v316_v36 = vsel %vm297_vm8, %v2132_v63, %v1917_v61  ;;  %v939_v15 = vrot.slane %v418_v11, 4  ;;  %v937_v13 = vrot.slane %v416_v34, 4  ;;  %v938_v48 = vrot.slane %v417_v1, 4 }
 0x158   :  { %v2126_v39 = vunpack.i.l.bf16 %v2125_v57  ;;  %1321 = vmatmul.mubr.f32.gmra.mrb[4].mxu1 %v3138_v4  ;;  %1391 = vmatprep.mubr.f32.mxu0 %v3302_v10  ;;  %v2127_v12 = vunpack.i.h.bf16 %v2125_v57  ;;  %v2140_v6 = vpop.permute.xlu1 %2139  ;;  %v1017_v18 = vsel %vm980_vm1, %v316_v36, %v920_v50  ;;  %v1992_v34 = vunpack.i.h.bf16 %v2988_v7 }
 0x159   :  { %1474 = vmatprep.mubr.f32.mxu1 %v3302_v10  ;;  %v2142_v33 = vunpack.i.h.bf16 %v2140_v6  ;;  %v2141_v59 = vunpack.i.l.bf16 %v2140_v6 }
 0x15a   :  { %v317_v2 = vsel %vm297_vm8, %v1917_v61, %v2126_v39  ;;  %v319_v55 = vsel %vm297_vm8, %v2127_v12, %v2131_v53  ;;  %v318_v32 = vsel %vm297_vm8, %v2126_v39, %v2127_v12  ;;  %v1962_v39 = vunpack.i.h.bf16 %v2950_v58 }
 0x15b   :  { %v2135_v23 = vpop.permute.xlu0 %2134  ;;  %v1018_v19 = vsel %vm980_vm1, %v317_v2, %v921_v5  ;;  %v382_v38 = vsel %vm363_vm11, %v2142_v33, %v1932_v29  ;;  %v1020_v8 = vsel %vm980_vm1, %v319_v55, %v923_v0  ;;  %v1019_v50 = vsel %vm980_vm1, %v318_v32, %v922_v41 }
 0x15c   :  { %v2137_v40 = vunpack.i.h.bf16 %v2135_v23  ;;  %v2136_v43 = vunpack.i.l.bf16 %v2135_v23  ;;  %v2150_v27 = vpop.permute.xlu1 %2149  ;;  %v1025_v56 = vsel %vm980_vm1, %v382_v38, %v936_v20  ;;  %v1987_v5 = vunpack.i.h.bf16 %v2962_v47 }
 0x15d   :  { %v1626_v31 = vpack.c.bf16 %v1025_v56, %v1017_v18  ;;  %v2152_v37 = vunpack.i.h.bf16 %v2150_v27  ;;  %v2151_v63 = vunpack.i.l.bf16 %v2150_v27  ;;  %vm3306_vm8 = vcmask 531456  }
 0x15e   :  { %v385_v26 = vsel %vm363_vm11, %v2137_v40, %v2141_v59  ;;  %v383_v9 = vsel %vm363_vm11, %v1932_v29, %v2136_v43  ;;  %v384_v16 = vsel %vm363_vm11, %v2136_v43, %v2137_v40  ;;  %vm3307_vm9 = vmmov %vm3306_vm8 }
 0x15f   :  { %v2145_v30 = vpop.permute.xlu0 %2144  ;;  %v1026_v60 = vsel %vm980_vm1, %v383_v9, %v937_v13  ;;  %v1028_v24 = vsel %vm980_vm1, %v385_v26, %v939_v15  ;;  %v1027_v42 = vsel %vm980_vm1, %v384_v16, %v938_v48  ;;  %v481_v57 = vsel %vm466_vm12, %v2152_v37, %v1957_v49  ;;  %vm3308_vm10 = vmmov %vm3306_vm8 }
 0x160   :  { %v1624_v61 = vpack.c.bf16 %v1026_v60, %v1018_v19  ;;  %v2146_v17 = vunpack.i.l.bf16 %v2145_v30  ;;  %v2160_v51 = vpop.permute.xlu1 %2159  ;;  %v1648_v44 = vpack.c.bf16 %v1028_v24, %v1020_v8  ;;  %v2147_v25 = vunpack.i.h.bf16 %v2145_v30  ;;  %vm3309_vm11 = vmmov %vm3306_vm8 }
 0x161   :  { %v2162_v14 = vunpack.i.h.bf16 %v2160_v51  ;;  %v1650_v36 = vpack.c.bf16 %v1027_v42, %v1019_v50  ;;  %v2161_v46 = vunpack.i.l.bf16 %v2160_v51  ;;  %v952_v2 = vrot.slane %v481_v57, 4 }
 0x162   :  { %1625 = vmatprep.subr.bf16.mxu0 %v1624_v61  ;;  %1649 = vmatprep.subr.bf16.mxu1 %v1648_v44  ;;  %v482_v53 = vsel %vm466_vm12, %v1957_v49, %v2146_v17  ;;  %v484_v3 = vsel %vm466_vm12, %v2147_v25, %v2151_v63  ;;  %v483_v13 = vsel %vm466_vm12, %v2146_v17, %v2147_v25  ;;  %vm3310_vm12 = vcmask 367616  }
 0x163   :  { %v2155_v29 = vpop.permute.xlu0 %2154  ;;  %1627 = vmatpush1.bf16.msra.mxu0 %v1626_v31  ;;  %1651 = vmatpush1.bf16.msra.mxu1 %v1650_v36  ;;  %v547_v20 = vsel %vm532_vm13, %v2162_v14, %v1962_v39  ;;  %v953_v47 = vrot.slane %v482_v53, 4  ;;  %v955_v37 = vrot.slane %v484_v3, 4  ;;  %v954_v25 = vrot.slane %v483_v13, 4 }
 0x164   :  { %v2170_v12 = vpop.permute.xlu1 %2169  ;;  %v2157_v6 = vunpack.i.h.bf16 %v2155_v29  ;;  %v2156_v18 = vunpack.i.l.bf16 %v2155_v29  ;;  %v968_v55 = vrot.slane %v547_v20, 4  ;;  %v2017_v53 = vunpack.i.h.bf16 %v3003_v28 }
 0x165   :  { %v2172_v11 = vunpack.i.h.bf16 %v2170_v12  ;;  %v2171_v23 = vunpack.i.l.bf16 %v2170_v12  ;;  %v2047_v3 = vunpack.i.h.bf16 %v3029_v52 }
 0x166   :  { %v550_v40 = vsel %vm532_vm13, %v2157_v6, %v2161_v46  ;;  %v548_v43 = vsel %vm532_vm13, %v1962_v39, %v2156_v18  ;;  %v549_v26 = vsel %vm532_vm13, %v2156_v18, %v2157_v6  ;;  %vm3311_vm13 = vmmov %vm3310_vm12 }
 0x167   :  { %v2165_v33 = vpop.permute.xlu0 %2164  ;;  %v448_v58 = vsel %vm429_vm14, %v2172_v11, %v1987_v5  ;;  %v971_v30 = vrot.slane %v550_v40, 4  ;;  %v969_v60 = vrot.slane %v548_v43, 4  ;;  %v970_v17 = vrot.slane %v549_v26, 4 }
 0x168   :  { %v2166_v59 = vunpack.i.l.bf16 %v2165_v33  ;;  %v2167_v19 = vunpack.i.h.bf16 %v2165_v33  ;;  %v2180_v1 = vpop.permute.xlu1 %2179  ;;  %v1033_v38 = vsel %vm980_vm1, %v448_v58, %v952_v2  ;;  %v2022_v33 = vunpack.i.h.bf16 %v3014_v21 }
 0x169   :  { %v2182_v15 = vunpack.i.h.bf16 %v2180_v1  ;;  %v2181_v27 = vunpack.i.l.bf16 %v2180_v1 }
 0x16a   :  { %v449_v7 = vsel %vm429_vm14, %v1987_v5, %v2166_v59  ;;  %v451_v24 = vsel %vm429_vm14, %v2167_v19, %v2171_v23  ;;  %v450_v63 = vsel %vm429_vm14, %v2166_v59, %v2167_v19  ;;  %v2052_v19 = vunpack.i.h.bf16 %v3049_v45  ;;  %vm3312_vm14 = vmmov %vm3310_vm12 }
 0x16b   :  { %v2175_v56 = vpop.permute.xlu0 %2174  ;;  %v1034_v0 = vsel %vm980_vm1, %v449_v7, %v953_v47  ;;  %v514_v9 = vsel %vm495_vm15, %v2182_v15, %v1992_v34  ;;  %v1036_v57 = vsel %vm980_vm1, %v451_v24, %v955_v37  ;;  %v1035_v6 = vsel %vm980_vm1, %v450_v63, %v954_v25 }
 0x16c   :  { %v2177_v16 = vunpack.i.h.bf16 %v2175_v56  ;;  %v2176_v48 = vunpack.i.l.bf16 %v2175_v56  ;;  %v2190_v31 = vpop.permute.xlu1 %2189  ;;  %v1041_v32 = vsel %vm980_vm1, %v514_v9, %v968_v55 }
 0x16d   :  { %v1630_v49 = vpack.c.bf16 %v1041_v32, %v1033_v38  ;;  %v2192_v29 = vunpack.i.h.bf16 %v2190_v31  ;;  %v2191_v12 = vunpack.i.l.bf16 %v2190_v31 }
 0x16e   :  { %v517_v61 = vsel %vm495_vm15, %v2177_v16, %v2181_v27  ;;  %v515_v8 = vsel %vm495_vm15, %v1992_v34, %v2176_v48  ;;  %v516_v41 = vsel %vm495_vm15, %v2176_v48, %v2177_v16  ;;  %vm3313_vm15 = vmmov %vm3310_vm12 }
 0x16f   :  { %v2185_v51 = vpop.permute.xlu0 %2184  ;;  %v1042_v44 = vsel %vm980_vm1, %v515_v8, %v969_v60  ;;  %v1044_v42 = vsel %vm980_vm1, %v517_v61, %v971_v30  ;;  %v1043_v5 = vsel %vm980_vm1, %v516_v41, %v970_v17  ;;  %v613_v18 = vsel %vm598_vm0, %v2192_v29, %v2017_v53 }
 0x170   :  { %v1628_v50 = vpack.c.bf16 %v1042_v44, %v1034_v0  ;;  %v2186_v14 = vunpack.i.l.bf16 %v2185_v51  ;;  %v1652_v39 = vpack.c.bf16 %v1044_v42, %v1036_v57  ;;  %v2187_v11 = vunpack.i.h.bf16 %v2185_v51 }
 0x171   :  { %v2200_v36 = vpop.permute.xlu1 %2199  ;;  %v1654_v2 = vpack.c.bf16 %v1043_v5, %v1035_v6  ;;  %v1049_v1 = vrot.slane %v613_v18, 4 }
 0x172   :  { %1629 = vmatprep.subr.bf16.mxu0 %v1628_v50  ;;  %1653 = vmatprep.subr.bf16.mxu1 %v1652_v39  ;;  %v2202_v34 = vunpack.i.h.bf16 %v2200_v36  ;;  %v614_v20 = vsel %vm598_vm0, %v2017_v53, %v2186_v14  ;;  %v2201_v28 = vunpack.i.l.bf16 %v2200_v36  ;;  %v616_v40 = vsel %vm598_vm0, %v2187_v11, %v2191_v12 }
 0x173   :  { %v2195_v46 = vpop.permute.xlu0 %2194  ;;  %1631 = vmatpush1.bf16.msra.mxu0 %v1630_v49  ;;  %1655 = vmatpush1.bf16.msra.mxu1 %v1654_v2  ;;  %v1050_v52 = vrot.slane %v614_v20, 4  ;;  %v615_v9 = vsel %vm598_vm0, %v2186_v14, %v2187_v11  ;;  %v1052_v44 = vrot.slane %v616_v40, 4  ;;  %vm3314_vm0 = vcmask 392192  }
 0x174   :  { %v2197_v59 = vunpack.i.h.bf16 %v2195_v46  ;;  %v2196_v47 = vunpack.i.l.bf16 %v2195_v46  ;;  %v679_v43 = vsel %vm664_vm2, %v2202_v34, %v2022_v33  ;;  %v1051_v53 = vrot.slane %v615_v9, 4 }
 0x175   :  { %v2210_v58 = vpop.permute.xlu1 %2209  ;;  %v1065_v16 = vrot.slane %v679_v43, 4 }
 0x176   :  { %v2212_v23 = vunpack.i.h.bf16 %v2210_v58  ;;  %v2211_v15 = vunpack.i.l.bf16 %v2210_v58  ;;  %v682_v56 = vsel %vm664_vm2, %v2197_v59, %v2201_v28  ;;  %v680_v0 = vsel %vm664_vm2, %v2022_v33, %v2196_v47 }
 0x177   :  { %v2205_v38 = vpop.permute.xlu0 %2204  ;;  %v681_v24 = vsel %vm664_vm2, %v2196_v47, %v2197_v59  ;;  %v1068_v61 = vrot.slane %v682_v56, 4  ;;  %v1066_v8 = vrot.slane %v680_v0, 4  ;;  %v2077_v33 = vunpack.i.h.bf16 %v3060_v22  ;;  %vm3315_vm2 = vmmov %vm3314_vm0 }
 0x178   :  { %v580_v21 = vsel %vm561_vm3, %v2212_v23, %v2047_v3  ;;  %v2206_v7 = vunpack.i.l.bf16 %v2205_v38  ;;  %v2207_v13 = vunpack.i.h.bf16 %v2205_v38  ;;  %v1067_v29 = vrot.slane %v681_v24, 4 }
 0x179   :  { %v2220_v55 = vpop.permute.xlu1 %2219  ;;  %v1113_v27 = vsel %vm980_vm1, %v580_v21, %v1049_v1  ;;  %v2082_v23 = vunpack.i.h.bf16 %v3064_v54 }
 0x17a   :  { %v581_v45 = vsel %vm561_vm3, %v2047_v3, %v2206_v7  ;;  %v2222_v26 = vunpack.i.h.bf16 %v2220_v55  ;;  %v2221_v48 = vunpack.i.l.bf16 %v2220_v55  ;;  %v583_v41 = vsel %vm561_vm3, %v2207_v13, %v2211_v15 }
 0x17b   :  { %v2215_v30 = vpop.permute.xlu0 %2214  ;;  %v1114_v60 = vsel %vm980_vm1, %v581_v45, %v1050_v52  ;;  %v582_v36 = vsel %vm561_vm3, %v2206_v7, %v2207_v13  ;;  %v1116_v5 = vsel %vm980_vm1, %v583_v41, %v1052_v44  ;;  %vm3316_vm3 = vmmov %vm3314_vm0 }
 0x17c   :  { %v646_v31 = vsel %vm3306_vm8, %v2222_v26, %v2052_v19  ;;  %v2217_v32 = vunpack.i.h.bf16 %v2215_v30  ;;  %v2216_v37 = vunpack.i.l.bf16 %v2215_v30  ;;  %v1115_v20 = vsel %vm980_vm1, %v582_v36, %v1051_v53 }
 0x17d   :  { %v2230_v17 = vpop.permute.xlu1 %2229  ;;  %v1121_v51 = vsel %vm980_vm1, %v646_v31, %v1065_v16 }
 0x17e   :  { %v649_v42 = vsel %vm3307_vm9, %v2217_v32, %v2221_v48  ;;  %v647_v49 = vsel %vm3308_vm10, %v2052_v19, %v2216_v37  ;;  %v648_v63 = vsel %vm3309_vm11, %v2216_v37, %v2217_v32  ;;  %v1634_v14 = vpack.c.bf16 %v1121_v51, %v1113_v27 }
 0x17f   :  { %v2225_v50 = vpop.permute.xlu0 %2224  ;;  %v1122_v57 = vsel %vm980_vm1, %v647_v49, %v1066_v8  ;;  %v1124_v25 = vsel %vm980_vm1, %v649_v42, %v1068_v61  ;;  %v1123_v6 = vsel %vm980_vm1, %v648_v63, %v1067_v29  ;;  %v2232_v18 = vunpack.i.h.bf16 %v2230_v17 }
 0x180   :  { %v1632_v39 = vpack.c.bf16 %v1122_v57, %v1114_v60  ;;  %v1656_v46 = vpack.c.bf16 %v1124_v25, %v1116_v5  ;;  %v2231_v11 = vunpack.i.l.bf16 %v2230_v17  ;;  %v2227_v34 = vunpack.i.h.bf16 %v2225_v50 }
 0x181   :  { %v2240_v12 = vpop.permute.xlu1 %2239  ;;  %v2226_v2 = vunpack.i.l.bf16 %v2225_v50  ;;  %v1658_v47 = vpack.c.bf16 %v1123_v6, %v1115_v20  ;;  %v745_v38 = vsel %vm730_vm5, %v2232_v18, %v2077_v33 }
 0x182   :  { %1633 = vmatprep.subr.bf16.mxu0 %v1632_v39  ;;  %1657 = vmatprep.subr.bf16.mxu1 %v1656_v46  ;;  %v2242_v58 = vunpack.i.h.bf16 %v2240_v12  ;;  %v2241_v28 = vunpack.i.l.bf16 %v2240_v12  ;;  %v748_v40 = vsel %vm730_vm5, %v2227_v34, %v2231_v11  ;;  %v1081_v27 = vrot.slane %v745_v38, 4 }
 0x183   :  { %v2235_v3 = vpop.permute.xlu0 %2234  ;;  %1635 = vmatpush1.bf16.msra.mxu0 %v1634_v14  ;;  %v746_v43 = vsel %vm730_vm5, %v2077_v33, %v2226_v2  ;;  %1659 = vmatpush1.bf16.msra.mxu1 %v1658_v47  ;;  %v747_v21 = vsel %vm730_vm5, %v2226_v2, %v2227_v34  ;;  %v1084_v56 = vrot.slane %v748_v40, 4  ;;  %vm3317_vm5 = vmmov %vm3314_vm0 }
 0x184   :  { %v2237_v59 = vunpack.i.h.bf16 %v2235_v3  ;;  %v2236_v19 = vunpack.i.l.bf16 %v2235_v3  ;;  %v811_v15 = vsel %vm3310_vm12, %v2242_v58, %v2082_v23  ;;  %v1082_v0 = vrot.slane %v746_v43, 4 }
 0x185   :  { %v2250_v1 = vpop.permute.xlu1 %2249  ;;  %v1083_v60 = vrot.slane %v747_v21, 4  ;;  %v1097_v24 = vrot.slane %v811_v15, 4 }
 0x186   :  { %v2252_v22 = vunpack.i.h.bf16 %v2250_v1  ;;  %v2251_v7 = vunpack.i.l.bf16 %v2250_v1  ;;  %v814_v13 = vsel %vm3311_vm13, %v2237_v59, %v2241_v28  ;;  %v812_v45 = vsel %vm3312_vm14, %v2082_v23, %v2236_v19 }
 0x187   :  { %v2245_v52 = vpop.permute.xlu0 %2244  ;;  %v813_v9 = vsel %vm3313_vm15, %v2236_v19, %v2237_v59  ;;  %v1100_v31 = vrot.slane %v814_v13, 4  ;;  %v1098_v51 = vrot.slane %v812_v45, 4 }
 0x188   :  { %v2247_v55 = vunpack.i.h.bf16 %v2245_v52  ;;  %v2246_v54 = vunpack.i.l.bf16 %v2245_v52  ;;  %v715_v16 = vsel %vm3314_vm0, %v2251_v7, %v2252_v22  ;;  %v1099_v44 = vrot.slane %v813_v9, 4 }
 0x189   :  { %v2260_v26 = vpop.permute.xlu1 %2259  ;;  %v1132_v49 = vsel %vm980_vm1, %v715_v16, %v1084_v56 }
 0x18a   :  { %v2262_v48 = vunpack.i.h.bf16 %v2260_v26  ;;  %v2261_v30 = vunpack.i.l.bf16 %v2260_v26  ;;  %v714_v32 = vsel %vm3315_vm2, %v2247_v55, %v2251_v7  ;;  %v713_v61 = vsel %vm3316_vm3, %v2246_v54, %v2247_v55 }
 0x18b   :  { %v2255_v37 = vpop.permute.xlu0 %2254  ;;  %v1130_v36 = vsel %vm980_vm1, %v713_v61, %v1082_v0  ;;  %v1131_v5 = vsel %vm980_vm1, %v714_v32, %v1083_v60 }
 0x18c   :  { %v781_v8 = vsel %vm759_vm4, %v2261_v30, %v2262_v48  ;;  %v2257_v41 = vunpack.i.h.bf16 %v2255_v37  ;;  %v2256_v17 = vunpack.i.l.bf16 %v2255_v37 }
 0x18d   :  { %v769_v42 = vpop.permute.xlu1 %768  ;;  %v1140_v63 = vsel %vm980_vm1, %v781_v8, %v1100_v31 }
 0x18e   :  { %v780_v29 = vsel %vm759_vm4, %v2257_v41, %v2261_v30  ;;  %v779_v50 = vsel %vm759_vm4, %v2256_v17, %v2257_v41  ;;  %v778_v57 = vsel %vm759_vm4, %v769_v42, %v2256_v17  ;;  %v1660_v25 = vpack.c.bf16 %v1140_v63, %v1132_v49 }
 0x18f   :  { %v703_v14 = vpop.permute.xlu0 %702  ;;  %v1138_v39 = vsel %vm980_vm1, %v779_v50, %v1098_v51  ;;  %v1139_v53 = vsel %vm980_vm1, %v780_v29, %v1099_v44  ;;  %v1137_v18 = vsel %vm980_vm1, %v778_v57, %v1097_v24 }
 0x190   :  { %v712_v12 = vsel %vm3317_vm5, %v703_v14, %v2246_v54  ;;  %1661 = vmatprep.subr.bf16.mxu1 %v1660_v25  ;;  %v1636_v46 = vpack.c.bf16 %v1138_v39, %v1130_v36  ;;  %v1662_v6 = vpack.c.bf16 %v1139_v53, %v1131_v5 }
 0x191   :  { %v1129_v11 = vsel %vm980_vm1, %v712_v12, %v1081_v27  ;;  %v839_v34 = vpop.permute.xlu1 %838 }
 0x192   :  { %v1638_v2 = vpack.c.bf16 %v1137_v18, %v1129_v11  ;;  %1637 = vmatprep.subr.bf16.mxu0 %v1636_v46  ;;  %1663 = vmatpush1.bf16.msra.mxu1 %v1662_v6 }
 0x193   :  { %v837_v33 = vpop.permute.xlu0 %836 }
 0x194   :  { %v845_v3 = vsel %vm825_vm7, %v837_v33, %v839_v34  ;;  %1639 = vmatpush1.bf16.msra.mxu0 %v1638_v2 }
 0x195   :  { %v1146_v20 = vsel %vm980_vm1, %v845_v3, 1.0  ;;  %v843_v58 = vpop.permute.xlu1 %842 }
 0x196   :  { %1564 = vmatprep.subr.msk.mxu0 %vm1149_vm6, %v1146_v20 }
 0x197   :  { %v841_v28 = vpop.permute.xlu0 %840 }
 0x198   :  { %v846_v59 = vsel %vm825_vm7, %v839_v34, %v841_v28  ;;  %v847_v47 = vsel %vm825_vm7, %v841_v28, %v843_v58 }
 0x199   :  { %v1147_v23 = vsel %vm980_vm1, %v846_v59, 1.0  ;;  %v1148_v19 = vsel %vm980_vm1, %v847_v47, 1.0 }
 0x19a   :  { %1566 = vmatprep.subr.msk.mxu1 %vm1149_vm6, %v1148_v19 }
 0x19b   :  { %v835_v1 = vpop.permute.xlu0 %834  ;;  %1567 = vmatpush1.msk.msra.mxu1 %vm1149_vm6, %v1147_v23 }
 0x19c   :  { %v844_v38 = vsel %vm825_vm7, %v835_v1, %v837_v33  ;;  %1475 = vmatmul.mubr.f32.vlgmr.msra.gmra.mrb[6].mxu1 %v3096_v35 }
 0x19d   :  { %v1145_v40 = vsel %vm980_vm1, %v844_v38, 1.0  ;;  %1480 = vmatprep.mubr.f32.mxu1 %v3302_v10 }
 0x19e   :  { %1565 = vmatpush1.msk.msra.mxu0 %vm1149_vm6, %v1145_v40 }
 0x19f   :  { %1392 = vmatmul.mubr.f32.vlgmr.msra.gmra.mrb[6].mxu0 %v3096_v35 }
 0x1a0   :  { %1397 = vmatprep.mubr.f32.mxu0 %v3302_v10  ;;  %1481 = vmatmul.mubr.f32.gmra.mrb[8].mxu1 %v3120_v62 }
 0x1a1   :  { %1486 = vmatprep.mubr.f32.mxu1 %v3302_v10 }
 0x1a3   :  { %1398 = vmatmul.mubr.f32.gmra.mrb[8].mxu0 %v3120_v62 }
 0x1a4   :  { %1403 = vmatprep.mubr.f32.mxu0 %v3302_v10  ;;  %1487 = vmatmul.mubr.f32.gmra.mrb[10].mxu1 %v3138_v4 }
 0x1a7   :  { %1404 = vmatmul.mubr.f32.gmra.mrb[10].mxu0 %v3138_v4 }
 0x220   :  { %v1227_v43 = vpop.f32.mrb[0].mxu0 }
 0x221   :  { %v1493_v22 = vmax.f32 %v1227_v43, 0.0  ;;  %v1229_v21 = vpop.f32.mrb[1].mxu0 }
 0x222   :  { %v1494_v7 = vmax.f32 %v1229_v21, 0.0 }
 0x223   :  { %1517 = vst [vmem:[#allocation7] sm:$0xff] %v1493_v22  ;;  %v1310_v35 = vpop.f32.mrb[0].mxu1 }
 0x224   :  { %v1495_v52 = vmax.f32 %v1310_v35, 0.0  ;;  %1518 = vst [vmem:[#allocation7 + $0x8] sm:$0xff] %v1494_v7  ;;  %v1312_v15 = vpop.f32.mrb[1].mxu1 }
 0x225   :  { %v1496_v13 = vmax.f32 %v1312_v15, 0.0 }
 0x226   :  { %1519 = vst [vmem:[#allocation7 + $0x10] sm:$0xff] %v1495_v52  ;;  %v1233_v55 = vpop.f32.mrb[2].mxu0 }
 0x227   :  { %1520 = vst [vmem:[#allocation7 + $0x18] sm:$0xff] %v1496_v13  ;;  %v1501_v62 = vmax.f32 %v1233_v55, 0.0  ;;  %v1316_v54 = vpop.f32.mrb[2].mxu1  ;;  %v1235_v10 = vpop.f32.mrb[3].mxu0 }
 0x228   :  { %v1503_v27 = vmax.f32 %v1316_v54, 0.0  ;;  %v1502_v56 = vmax.f32 %v1235_v10, 0.0  ;;  %v1318_v0 = vpop.f32.mrb[3].mxu1 }
 0x229   :  { %1521 = vst [vmem:[#allocation7 + $0x20] sm:$0xff] %v1501_v62  ;;  %v1504_v4 = vmax.f32 %v1318_v0, 0.0 }
 0x22a   :  { %1523 = vst [vmem:[#allocation7 + $0x30] sm:$0xff] %v1503_v27  ;;  %1522 = vst [vmem:[#allocation7 + $0x28] sm:$0xff] %v1502_v56  ;;  %v1239_v45 = vpop.f32.mrb[4].mxu0 }
 0x22b   :  { %1524 = vst [vmem:[#allocation7 + $0x38] sm:$0xff] %v1504_v4  ;;  %v1509_v26 = vmax.f32 %v1239_v45, 0.0  ;;  %v1322_v9 = vpop.f32.mrb[4].mxu1  ;;  %v1241_v16 = vpop.f32.mrb[5].mxu0 }
 0x22c   :  { %v1511_v48 = vmax.f32 %v1322_v9, 0.0  ;;  %v1510_v30 = vmax.f32 %v1241_v16, 0.0  ;;  %v1324_v60 = vpop.f32.mrb[5].mxu1 }
 0x22d   :  { %1525 = vst [vmem:[#allocation7 + $0x40] sm:$0xff] %v1509_v26  ;;  %v1512_v24 = vmax.f32 %v1324_v60, 0.0 }
 0x22e   :  { %1527 = vst [vmem:[#allocation7 + $0x50] sm:$0xff] %v1511_v48  ;;  %1526 = vst [vmem:[#allocation7 + $0x48] sm:$0xff] %v1510_v30 }
 0x22f   :  { %1528 = vst [vmem:[#allocation7 + $0x58] sm:$0xff] %v1512_v24 }
 0x26f   :  { %v1476_v31 = vpop.f32.mrb[6].mxu1 }
 0x270   :  { %v1499_v32 = vmax.f32 %v1476_v31, 0.0  ;;  %v1478_v37 = vpop.f32.mrb[7].mxu1 }
 0x271   :  { %v1500_v61 = vmax.f32 %v1478_v37, 0.0 }
 0x272   :  { %1532 = vst [vmem:[#allocation7 + $0x70] sm:$0xff] %v1499_v32  ;;  %v1393_v8 = vpop.f32.mrb[6].mxu0 }
 0x273   :  { %v1497_v41 = vmax.f32 %v1393_v8, 0.0  ;;  %1533 = vst [vmem:[#allocation7 + $0x78] sm:$0xff] %v1500_v61  ;;  %v1395_v17 = vpop.f32.mrb[7].mxu0  ;;  %v1482_v51 = vpop.f32.mrb[8].mxu1 }
 0x274   :  { %v1498_v44 = vmax.f32 %v1395_v17, 0.0  ;;  %v1507_v42 = vmax.f32 %v1482_v51, 0.0  ;;  %v1484_v49 = vpop.f32.mrb[9].mxu1 }
 0x275   :  { %1530 = vst [vmem:[#allocation7 + $0x60] sm:$0xff] %v1497_v41  ;;  %v1508_v63 = vmax.f32 %v1484_v49, 0.0 }
 0x276   :  { %1531 = vst [vmem:[#allocation7 + $0x68] sm:$0xff] %v1498_v44  ;;  %1536 = vst [vmem:[#allocation7 + $0x90] sm:$0xff] %v1507_v42  ;;  %v1399_v29 = vpop.f32.mrb[8].mxu0 }
 0x277   :  { %v1505_v50 = vmax.f32 %v1399_v29, 0.0  ;;  %1537 = vst [vmem:[#allocation7 + $0x98] sm:$0xff] %v1508_v63  ;;  %v1401_v57 = vpop.f32.mrb[9].mxu0  ;;  %v1488_v25 = vpop.f32.mrb[10].mxu1 }
 0x278   :  { %v1506_v14 = vmax.f32 %v1401_v57, 0.0  ;;  %v1515_v36 = vmax.f32 %v1488_v25, 0.0  ;;  %v1490_v39 = vpop.f32.mrb[11].mxu1 }
 0x279   :  { %1534 = vst [vmem:[#allocation7 + $0x80] sm:$0xff] %v1505_v50  ;;  %v1516_v5 = vmax.f32 %v1490_v39, 0.0 }
 0x27a   :  { %1535 = vst [vmem:[#allocation7 + $0x88] sm:$0xff] %v1506_v14  ;;  %1540 = vst [vmem:[#allocation7 + $0xb0] sm:$0xff] %v1515_v36  ;;  %v1405_v53 = vpop.f32.mrb[10].mxu0 }
 0x27b   :  { %v1513_v12 = vmax.f32 %v1405_v53, 0.0  ;;  %1541 = vst [vmem:[#allocation7 + $0xb8] sm:$0xff] %v1516_v5  ;;  %v1407_v46 = vpop.f32.mrb[11].mxu0 }
 0x27c   :  { %v1514_v6 = vmax.f32 %v1407_v46, 0.0 }
 0x27d   :  { %1538 = vst [vmem:[#allocation7 + $0xa0] sm:$0xff] %v1513_v12 }
 0x27e   :  { %1539 = vst [vmem:[#allocation7 + $0xa8] sm:$0xff] %v1514_v6 }
 0x27f   :  { %2325 = shalt.err (!%p2322_p6)
}
 0x280   :  { %s2326_s7 = scalar_lea.hbm %s3292_s2, 3072 }
 0x281   :  { %p2327_p7 = scmp.ne.s32.totalorder %s3292_s2, %s2326_s7  ;;  %p2330_p8 = scmp.lt.u32.totalorder %s2326_s7, %s3292_s2 }
 0x283   :  { %p2332_p9 = pnand %p2330_p8, %p2327_p7 }
 0x285   :  { %2335 = shalt.err (!%p2332_p9)
}
 0x286   :  { %s2374_s11 = smov 512   ;;  %s2375_s12 = smov 32  }
 0x287   :  { %1553 = dma.vmem_to_hbm [thread:$0]  %s1548_s4, 3072, %s3292_s2, [#allocation4], %s2374_s11, %s2374_s11, %s2375_s12  }
 0x288   :  { %2340 = dma.done.wait [#allocation4], 3072  }
 0x289   :  { %2341 = vsyncadd [#allocation4], 4294964224 }
 0x28a   :  { %1557 = vsyncpa [#allocation3], 1 }
 0x28b   :  { %1558 = vsyncpa [#allocation6], 1 }
 0x28c   :  { %1559 = vsyncpa [#allocation4], 1 }

</bundles_post_ra>
